<compile_context>
chip_gen: v6e
topology: v6e:2x2x1
jax: 0.10.0
libtpu: 0.0.40
codegen_flags: <defaults>
</compile_context>

<pallas_src>
import jax
import jax.numpy as jnp
from jax import lax
from jax.experimental import pallas as pl
from jax.experimental.pallas import tpu as pltpu

BN_EPS = 1e-5


def _round_up(x, m):
    return ((x + m - 1) // m) * m


# ----------------------------- Pallas kernel --------------------------------
def _grasp_mlp_kernel(x_ref, w0_ref, t0_ref,
                      w1_ref, t1_ref,
                      w2_ref, t2_ref,
                      w3_ref, b3_ref, out_ref, acc_ref):
    # One grid step = one (batch element, grasp tile).
    #   x_ref  : (C, TILE_G, P) f32   native-layout input block (no relayout)
    #   w0_ref : (C, C_out, P)  bf16  layer-0 weight, BN scale folded, c_in-major
    #   t*_ref : (C_out, 1)     f32   BN shifts
    #   w1_ref : (H1, C) bf16, w2_ref: (H2, H1) bf16, w3_ref: (H2, 1) f32
    #   out_ref: (1, TILE_G) f32      lane-dense scores
    #   acc_ref: (C, TILE_G) f32      layer-0 accumulator scratch
    c_in = x_ref.shape[0]

    # ---- layer 0: weighted_mean Conv2d(C, C, k=(1,P), no bias) + BN + ReLU ----
    # Contract (c, p) jointly: loop over c; contract P on the MXU as an A.B^T
    # ("nt") matmul so candidates land on lanes without transposing the block.
    acc_ref[...] = jnp.zeros_like(acc_ref)

    def _layer0_step(c, carry):
        x_c = x_ref[c].astype(jnp.bfloat16)                     # (TILE_G, P)
        w_c = w0_ref[c]                                         # (C_out, P) bf16
        acc_ref[...] += lax.dot_general(
            w_c, x_c, (((1,), (1,)), ((), ())),                 # contract P w/ P
            preferred_element_type=jnp.float32)                 # (C_out, TILE_G)
        return carry

    lax.fori_loop(0, c_in, _layer0_step, 0)

    # fused BN shift + ReLU + downcast (only the bf16 copy stays live)
    h = jnp.maximum(acc_ref[...] + t0_ref[...], 0.0).astype(jnp.bfloat16)

    # ---- layer 1: conv1 Conv1d(C, 512, 1, no bias) + BN + ReLU ----
    h = jnp.dot(w1_ref[...], h, preferred_element_type=jnp.float32)
    h = jnp.maximum(h + t1_ref[...], 0.0).astype(jnp.bfloat16)

    # ---- layer 2: score[0] Conv1d(512, 256, 1, no bias) + BN + ReLU ----
    h = jnp.dot(w2_ref[...], h, preferred_element_type=jnp.float32)
    h = jnp.maximum(h + t2_ref[...], 0.0)                        # f32 for the head

    # ---- layer 3: score[1] Conv1d(256, 1, 1, bias) + Sigmoid ----
    # N=1 matmul wastes the MXU -> VPU multiply + sublane (XLU) reduction.
    logits = jnp.sum(h * w3_ref[...], axis=0, keepdims=True) + b3_ref[...]
    # numerically-stable sigmoid; exact reciprocal (EUP slot has plenty of slack)
    e = jnp.exp(-jnp.abs(logits))                                # in (0, 1]
    num = jnp.where(logits >= 0.0, 1.0, e)
    out_ref[...] = num * pl.reciprocal(1.0 + e)


# ----------------------------- helpers ---------------------------------------
def _fold_bn_into_weight(w2d, gamma, beta, mean, var, eps=BN_EPS):
    """Fold eval-mode BN (running stats) into 1x1 conv rows: bf16 W, f32 shift."""
    s = gamma / jnp.sqrt(var + eps)
    w_folded = (w2d.astype(jnp.float32) * s[:, None]).astype(jnp.bfloat16)
    t = (beta - mean * s).reshape(-1, 1).astype(jnp.float32)
    return w_folded, t


def _fold_bn0(w0, gamma, beta, mean, var, eps=BN_EPS):
    """Layer-0 weight (C_out, C_in, 1, P) -> c_in-major (C_in, C_out, P) bf16."""
    s = gamma / jnp.sqrt(var + eps)
    w = w0[:, :, 0, :].astype(jnp.float32) * s[:, None, None]    # (C_out, C_in, P)
    w = jnp.transpose(w, (1, 0, 2)).astype(jnp.bfloat16)         # (C_in, C_out, P)
    t = (beta - mean * s).reshape(-1, 1).astype(jnp.float32)
    return w, t


def _vmem_budget_bytes():
    """~75% of physical VMEM: ~48 MiB on v7x, ~96 MiB on v5e/v6e."""
    try:
        cap = pltpu.get_tpu_info().vmem_capacity_bytes
    except Exception:
        cap = 64 * 1024 * 1024          # conservative default (v7x capacity)
    return int(cap * 3 // 4)


# ----------------------------- forward ---------------------------------------
@jax.jit
def grasp_classifier_forward(gather_feat, params):
    """Pallas implementation of GraspClassifier.forward (eval-mode BN).

    gather_feat: (B, C, G, P) float32, native PyTorch NCHW layout, consumed
                 directly by the kernel (no wrapper transpose / pad / cast).
    returns:     (B, G) sigmoid grasp scores.
    """
    B, C, G, P = gather_feat.shape
    H1 = params["w1"].shape[0]   # 512
    H2 = params["w2"].shape[0]   # 256

    # ---- fold eval-mode BN into the conv weights (tiny tensors) ----
    w0, t0 = _fold_bn0(params["w0"], params["bn0_gamma"], params["bn0_beta"],
                       params["bn0_mean"], params["bn0_var"])
    w1, t1 = _fold_bn_into_weight(params["w1"][:, :, 0],
                                  params["bn1_gamma"], params["bn1_beta"],
                                  params["bn1_mean"], params["bn1_var"])
    w2, t2 = _fold_bn_into_weight(params["w2"][:, :, 0],
                                  params["bn2_gamma"], params["bn2_beta"],
                                  params["bn2_mean"], params["bn2_var"])
    w3 = params["w3"][0, :, 0].reshape(H2, 1).astype(jnp.float32)  # head on the VPU
    b3 = params["b3"].reshape(1, 1).astype(jnp.float32)

    # ---- grasp-tile size from the per-generation VMEM budget ----
    budget = _vmem_budget_bytes()
    # bytes of VMEM per grasp candidate:
    #   double-buffered f32 input block (8*C*P) + layer-0 f32 accumulator (4*C)
    #   + f32/bf16 copies of the hidden activations (~6*(C+H1+H2)).
    per_cand = 8 * C * P + 4 * C + 6 * (C + H1 + H2)
    w_bytes = 2 * 2 * (C * C * P + H1 * C + H2 * H1 + H2)   # bf16, double-buffered
    avail = max(budget - w_bytes - (2 << 20), 128 * per_cand)
    tile_g = max(128, min(2048, (avail // per_cand) // 128 * 128))

    if B == 1 and G > 256:
        # keep >= 2 grid steps so both v7x TensorCores get work
        tile_g = min(tile_g, _round_up(pl.cdiv(G, 2), 128))

    if tile_g >= G:
        tile_g, gp = G, G            # single full-dim tile (always layout-legal)
    else:
        gp = _round_up(G, tile_g)    # ragged last tile: OOB reads tolerated,
    n_g = gp // tile_g               # garbage columns sliced off below

    const = lambda shape: pl.BlockSpec(shape, lambda b, g: (0,) * len(shape))

    out = pl.pallas_call(
        _grasp_mlp_kernel,
        out_shape=jax.ShapeDtypeStruct((B, 1, gp), jnp.float32),
        grid=(B, n_g),
        in_specs=[
            # native (B, C, G, P) block; candidates tiled along G
            pl.BlockSpec((None, C, tile_g, P), lambda b, g: (b, 0, g, 0)),
            const((C, C, P)),     # w0 (c_in, c_out, p), BN folded
            const((C, 1)),        # t0
            const((H1, C)),       # w1
            const((H1, 1)),       # t1
            const((H2, H1)),      # w2
            const((H2, 1)),       # t2
            const((H2, 1)),       # w3
            const((1, 1)),        # b3
        ],
        out_specs=pl.BlockSpec((None, 1, tile_g), lambda b, g: (b, 0, g)),
        scratch_shapes=[pltpu.VMEM((C, tile_g), jnp.float32)],
        compiler_params=pltpu.CompilerParams(
            dimension_semantics=("parallel", "parallel"),
            vmem_limit_bytes=budget),
    )(gather_feat, w0, t0, w1, t1, w2, t2, w3, b3)

    return out.reshape(B, gp)[:, :G]


# ----------------------------- reference (plain JAX, f32) --------------------
def _bn_eval(x, gamma, beta, mean, var, axis=1, eps=BN_EPS):
    shape = [1] * x.ndim
    shape[axis] = -1
    return (x - mean.reshape(shape)) / jnp.sqrt(var.reshape(shape) + eps) \
        * gamma.reshape(shape) + beta.reshape(shape)


def reference_forward(gather_feat, params):
    """Literal transcription of the PyTorch forward (eval-mode BN)."""
    x = gather_feat                                            # (B, C, G, P)
    w0 = params["w0"][:, :, 0, :]                              # (C, C, P)
    h = jnp.einsum("bigp,oip->bog", x, w0)                     # (B, C, G)
    h = jnp.maximum(_bn_eval(h, params["bn0_gamma"], params["bn0_beta"],
                             params["bn0_mean"], params["bn0_var"]), 0.0)
    feat = jnp.transpose(h, (2, 1, 0))                         # (G, C, B)
    h = jnp.einsum("gcb,oc->gob", feat, params["w1"][:, :, 0])
    h = jnp.maximum(_bn_eval(h, params["bn1_gamma"], params["bn1_beta"],
                             params["bn1_mean"], params["bn1_var"]), 0.0)
    h = jnp.einsum("gcb,oc->gob", h, params["w2"][:, :, 0])
    h = jnp.maximum(_bn_eval(h, params["bn2_gamma"], params["bn2_beta"],
                             params["bn2_mean"], params["bn2_var"]), 0.0)
    h = jnp.einsum("gcb,oc->gob", h, params["w3"][:, :, 0]) \
        + params["b3"].reshape(1, -1, 1)
    score = jax.nn.sigmoid(h)                                  # (G, 1, B)
    score = jnp.transpose(score, (2, 1, 0))                    # (B, 1, G)
    score = jnp.transpose(score, (0, 2, 1))                    # (B, G, 1)
    return score[..., 0]                                       # (B, G)


# ----------------------------- parameter init --------------------------------
def init_params(key, input_dim=128, point_num=50, hidden1=512, hidden2=256):
    ks = jax.random.split(key, 20)
    u = lambda k, shape, s: jax.random.uniform(k, shape, jnp.float32, -s, s)
    pos = lambda k, shape: jax.random.uniform(k, shape, jnp.float32, 0.5, 1.5)
    C = input_dim
    return {
        # weighted_mean: Conv2d(C, C, kernel=(1, P), bias=False) + BN2d
        "w0": u(ks[0], (C, C, 1, point_num), 0.05),
        "bn0_gamma": pos(ks[1], (C,)), "bn0_beta": u(ks[2], (C,), 0.1),
        "bn0_mean": u(ks[3], (C,), 0.1), "bn0_var": pos(ks[4], (C,)),
        # conv1: Conv1d(C, 512, 1, bias=False) + BN1d
        "w1": u(ks[5], (hidden1, C, 1), 0.05),
        "bn1_gamma": pos(ks[6], (hidden1,)), "bn1_beta": u(ks[7], (hidden1,), 0.1),
        "bn1_mean": u(ks[8], (hidden1,), 0.1), "bn1_var": pos(ks[9], (hidden1,)),
        # score[0]: Conv1d(512, 256, 1, bias=False) + BN1d
        "w2": u(ks[10], (hidden2, hidden1, 1), 0.05),
        "bn2_gamma": pos(ks[11], (hidden2,)), "bn2_beta": u(ks[12], (hidden2,), 0.1),
        "bn2_mean": u(ks[13], (hidden2,), 0.1), "bn2_var": pos(ks[14], (hidden2,)),
        # score[1]: Conv1d(256, 1, 1, bias=True), no BN, no activation
        "w3": u(ks[15], (1, hidden2, 1), 0.05),
        "b3": u(ks[16], (1,), 0.1),
    }


# ----------------------------- main -------------------------------------------
if __name__ == "__main__":
    key = jax.random.PRNGKey(0)
    kx, kp = jax.random.split(key)

    # Small shapes consistent with the module: (B, input_dim, num_grasps, point_num)
    B, C, G, P = 2, 32, 16, 8
    params = init_params(kp, input_dim=C, point_num=P)
    gather_feat = jax.random.normal(kx, (B, C, G, P), jnp.float32)

    out = grasp_classifier_forward(gather_feat, params)
    out = jax.block_until_ready(out)

    ref = reference_forward(gather_feat, params)
    assert out.shape == (B, G), out.shape
    # Error now comes only from the bf16 MXU inputs (exact reciprocal, stable
    # sigmoid) -> tighter tolerance than the previous version.
    if not jnp.allclose(out, ref, rtol=1e-2, atol=1e-2):
        raise AssertionError("Pallas kernel output does not match JAX reference")

    print("KERNEL_OK")
</pallas_src>

<mosaic_0001>
module attributes {stable_mosaic.version = 11 : i64} {
  func.func @_grasp_mlp_kernel(%arg0: i32, %arg1: i32, %arg2: memref<1x32x16x8xf32, #tpu.memory_space<vmem>>, %arg3: memref<32x32x8xbf16, #tpu.memory_space<vmem>>, %arg4: memref<32x1xf32, #tpu.memory_space<vmem>>, %arg5: memref<512x32xbf16, #tpu.memory_space<vmem>>, %arg6: memref<512x1xf32, #tpu.memory_space<vmem>>, %arg7: memref<256x512xbf16, #tpu.memory_space<vmem>>, %arg8: memref<256x1xf32, #tpu.memory_space<vmem>>, %arg9: memref<256x1xf32, #tpu.memory_space<vmem>>, %arg10: memref<1x1xf32, #tpu.memory_space<vmem>>, %arg11: memref<1x1x16xf32, #tpu.memory_space<vmem>>, %arg12: memref<32x16xf32, #tpu.memory_space<vmem>>) attributes {dimension_semantics = [#tpu.dimension_semantics<parallel>, #tpu.dimension_semantics<parallel>], iteration_bounds = array<i64: 2, 1>, scalar_prefetch = 0 : i64, scratch_operands = 1 : i64, tpu.core_type = #tpu.core_type<tc>, window_params = [{transform_indices = @transform_0, window_bounds = array<i64: 1, 32, 16, 8>}, {pipeline_mode = #tpu.pipeline_mode<synchronous>, transform_indices = @transform_1, window_bounds = array<i64: 32, 32, 8>}, {pipeline_mode = #tpu.pipeline_mode<synchronous>, transform_indices = @transform_2, window_bounds = array<i64: 32, 1>}, {pipeline_mode = #tpu.pipeline_mode<synchronous>, transform_indices = @transform_3, window_bounds = array<i64: 512, 32>}, {pipeline_mode = #tpu.pipeline_mode<synchronous>, transform_indices = @transform_4, window_bounds = array<i64: 512, 1>}, {pipeline_mode = #tpu.pipeline_mode<synchronous>, transform_indices = @transform_5, window_bounds = array<i64: 256, 512>}, {pipeline_mode = #tpu.pipeline_mode<synchronous>, transform_indices = @transform_6, window_bounds = array<i64: 256, 1>}, {pipeline_mode = #tpu.pipeline_mode<synchronous>, transform_indices = @transform_7, window_bounds = array<i64: 256, 1>}, {pipeline_mode = #tpu.pipeline_mode<synchronous>, transform_indices = @transform_8, window_bounds = array<i64: 1, 1>}, {transform_indices = @transform_9, window_bounds = array<i64: 1, 1, 16>}]} {
    %cst = arith.constant 0.000000e+00 : f32
    %0 = vector.broadcast %cst : f32 to vector<32x16xf32>
    %c0 = arith.constant 0 : index
    %c0_0 = arith.constant 0 : index
    %1 = vector.load %arg12[%c0, %c0_0] : memref<32x16xf32, #tpu.memory_space<vmem>>, vector<32x16xf32>
    tpu.vector_store %arg12[%c0, %c0_0], %0 {strides = array<i32>} : memref<32x16xf32, #tpu.memory_space<vmem>>, vector<32x16xf32>,
    %c0_i32 = arith.constant 0 : i32
    %c32_i32 = arith.constant 32 : i32
    %2 = arith.addi %c0_i32, %c32_i32 : i32
    %c1_i32 = arith.constant 1 : i32
    scf.for %arg13 = %c0_i32 to %2 step %c1_i32  : i32 {
      %c0_31 = arith.constant 0 : index
      %48 = arith.index_cast %arg13 : i32 to index
      %c0_32 = arith.constant 0 : index
      %c0_33 = arith.constant 0 : index
      %49 = vector.load %arg2[%c0_31, %48, %c0_32, %c0_33] : memref<1x32x16x8xf32, #tpu.memory_space<vmem>>, vector<1x1x16x8xf32>
      %50 = vector.shape_cast %49 : vector<1x1x16x8xf32> to vector<16x8xf32>
      %51 = arith.truncf %50 : vector<16x8xf32> to vector<16x8xbf16>
      %52 = arith.index_cast %arg13 : i32 to index
      %c0_34 = arith.constant 0 : index
      %c0_35 = arith.constant 0 : index
      %53 = vector.load %arg3[%52, %c0_34, %c0_35] : memref<32x32x8xbf16, #tpu.memory_space<vmem>>, vector<1x32x8xbf16>
      %54 = vector.shape_cast %53 : vector<1x32x8xbf16> to vector<32x8xbf16>
      %c0_36 = arith.constant 0 : index
      %c0_37 = arith.constant 0 : index
      %55 = vector.load %arg12[%c0_36, %c0_37] : memref<32x16xf32, #tpu.memory_space<vmem>>, vector<32x16xf32>
      %cst_38 = arith.constant dense<0.000000e+00> : vector<32x16xf32>
      %56 = tpu.matmul %54, %51, %cst_38 {dimension_numbers = #tpu.dot_dimension_numbers<[1], [1], [0], [0], [0, 0, 1, 0], [], []>} : vector<32x8xbf16>, vector<16x8xbf16>, vector<32x16xf32> -> vector<32x16xf32>
      %57 = arith.addf %55, %56 : vector<32x16xf32>
      %c0_39 = arith.constant 0 : index
      %c0_40 = arith.constant 0 : index
      %58 = vector.load %arg12[%c0_39, %c0_40] : memref<32x16xf32, #tpu.memory_space<vmem>>, vector<32x16xf32>
      tpu.vector_store %arg12[%c0_39, %c0_40], %57 {strides = array<i32>} : memref<32x16xf32, #tpu.memory_space<vmem>>, vector<32x16xf32>,
    }
    %c32_i32_1 = arith.constant 32 : i32
    %c0_2 = arith.constant 0 : index
    %c0_3 = arith.constant 0 : index
    %3 = vector.load %arg12[%c0_2, %c0_3] : memref<32x16xf32, #tpu.memory_space<vmem>>, vector<32x16xf32>
    %c0_4 = arith.constant 0 : index
    %c0_5 = arith.constant 0 : index
    %4 = vector.load %arg4[%c0_4, %c0_5] : memref<32x1xf32, #tpu.memory_space<vmem>>, vector<32x1xf32>
    %5 = vector.broadcast %4 : vector<32x1xf32> to vector<32x16xf32>
    %6 = arith.addf %3, %5 : vector<32x16xf32>
    %cst_6 = arith.constant 0.000000e+00 : f32
    %7 = vector.broadcast %cst_6 : f32 to vector<32x16xf32>
    %8 = arith.maximumf %6, %7 : vector<32x16xf32>
    %9 = arith.truncf %8 : vector<32x16xf32> to vector<32x16xbf16>
    %c0_7 = arith.constant 0 : index
    %c0_8 = arith.constant 0 : index
    %10 = vector.load %arg5[%c0_7, %c0_8] : memref<512x32xbf16, #tpu.memory_space<vmem>>, vector<512x32xbf16>
    %cst_9 = arith.constant dense<0.000000e+00> : vector<512x16xf32>
    %11 = tpu.matmul %10, %9, %cst_9 {dimension_numbers = #tpu.dot_dimension_numbers<[1], [0], [0], [1], [0, 0, 1, 1], [], []>} : vector<512x32xbf16>, vector<32x16xbf16>, vector<512x16xf32> -> vector<512x16xf32>
    %c0_10 = arith.constant 0 : index
    %c0_11 = arith.constant 0 : index
    %12 = vector.load %arg6[%c0_10, %c0_11] : memref<512x1xf32, #tpu.memory_space<vmem>>, vector<512x1xf32>
    %13 = vector.broadcast %12 : vector<512x1xf32> to vector<512x16xf32>
    %14 = arith.addf %11, %13 : vector<512x16xf32>
    %cst_12 = arith.constant 0.000000e+00 : f32
    %15 = vector.broadcast %cst_12 : f32 to vector<512x16xf32>
    %16 = arith.maximumf %14, %15 : vector<512x16xf32>
    %17 = arith.truncf %16 : vector<512x16xf32> to vector<512x16xbf16>
    %c0_13 = arith.constant 0 : index
    %c0_14 = arith.constant 0 : index
    %18 = vector.load %arg7[%c0_13, %c0_14] : memref<256x512xbf16, #tpu.memory_space<vmem>>, vector<256x512xbf16>
    %cst_15 = arith.constant dense<0.000000e+00> : vector<256x16xf32>
    %19 = tpu.matmul %18, %17, %cst_15 {dimension_numbers = #tpu.dot_dimension_numbers<[1], [0], [0], [1], [0, 0, 1, 1], [], []>} : vector<256x512xbf16>, vector<512x16xbf16>, vector<256x16xf32> -> vector<256x16xf32>
    %c0_16 = arith.constant 0 : index
    %c0_17 = arith.constant 0 : index
    %20 = vector.load %arg8[%c0_16, %c0_17] : memref<256x1xf32, #tpu.memory_space<vmem>>, vector<256x1xf32>
    %21 = vector.broadcast %20 : vector<256x1xf32> to vector<256x16xf32>
    %22 = arith.addf %19, %21 : vector<256x16xf32>
    %cst_18 = arith.constant 0.000000e+00 : f32
    %23 = vector.broadcast %cst_18 : f32 to vector<256x16xf32>
    %24 = arith.maximumf %22, %23 : vector<256x16xf32>
    %c0_19 = arith.constant 0 : index
    %c0_20 = arith.constant 0 : index
    %25 = vector.load %arg9[%c0_19, %c0_20] : memref<256x1xf32, #tpu.memory_space<vmem>>, vector<256x1xf32>
    %26 = vector.broadcast %25 : vector<256x1xf32> to vector<256x16xf32>
    %27 = arith.mulf %24, %26 : vector<256x16xf32>
    %cst_21 = arith.constant dense<0.000000e+00> : vector<16xf32>
    %28 = vector.multi_reduction <add>, %27, %cst_21 [0] : vector<256x16xf32> to vector<16xf32>
    %29 = vector.shape_cast %28 : vector<16xf32> to vector<1x16xf32>
    %c0_22 = arith.constant 0 : index
    %c0_23 = arith.constant 0 : index
    %30 = vector.load %arg10[%c0_22, %c0_23] : memref<1x1xf32, #tpu.memory_space<vmem>>, vector<1x1xf32>
    %31 = vector.broadcast %30 : vector<1x1xf32> to vector<1x16xf32>
    %32 = arith.addf %29, %31 : vector<1x16xf32>
    %33 = math.absf %32 : vector<1x16xf32>
    %cst_24 = arith.constant 0.000000e+00 : f32
    %34 = vector.broadcast %cst_24 : f32 to vector<1x16xf32>
    %35 = arith.subf %34, %33 : vector<1x16xf32>
    %36 = math.exp %35 : vector<1x16xf32>
    %cst_25 = arith.constant 0.000000e+00 : f32
    %37 = vector.broadcast %cst_25 : f32 to vector<1x16xf32>
    %38 = arith.cmpf oge, %32, %37 : vector<1x16xf32>
    %cst_26 = arith.constant 1.000000e+00 : f32
    %39 = vector.broadcast %cst_26 : f32 to vector<1x16xf32>
    %40 = arith.select %38, %39, %36 : vector<1x16xi1>, vector<1x16xf32>
    %cst_27 = arith.constant 1.000000e+00 : f32
    %41 = vector.broadcast %cst_27 : f32 to vector<1x16xf32>
    %42 = arith.addf %41, %36 : vector<1x16xf32>
    %43 = tpu.reciprocal %42 : vector<1x16xf32> -> vector<1x16xf32>
    %44 = arith.mulf %40, %43 : vector<1x16xf32>
    %c0_28 = arith.constant 0 : index
    %c0_29 = arith.constant 0 : index
    %c0_30 = arith.constant 0 : index
    %45 = vector.load %arg11[%c0_28, %c0_29, %c0_30] : memref<1x1x16xf32, #tpu.memory_space<vmem>>, vector<1x1x16xf32>
    %46 = vector.shape_cast %45 : vector<1x1x16xf32> to vector<1x16xf32>
    %47 = vector.shape_cast %44 : vector<1x16xf32> to vector<1x1x16xf32>
    tpu.vector_store %arg11[%c0_28, %c0_29, %c0_30], %47 {strides = array<i32>} : memref<1x1x16xf32, #tpu.memory_space<vmem>>, vector<1x1x16xf32>,
    return
  }
  func.func @transform_0(%arg0: i32, %arg1: i32) -> (i32, i32, i32, i32) {
    %c0_i32 = arith.constant 0 : i32
    %c0_i32_0 = arith.constant 0 : i32
    %c0_i32_1 = arith.constant 0 : i32
    return %arg0, %c0_i32, %arg1, %c0_i32_0 : i32, i32, i32, i32
  }
  func.func @transform_1(%arg0: i32, %arg1: i32) -> (i32, i32, i32) {
    %c0_i32 = arith.constant 0 : i32
    %c0_i32_0 = arith.constant 0 : i32
    %c0_i32_1 = arith.constant 0 : i32
    %c0_i32_2 = arith.constant 0 : i32
    return %c0_i32, %c0_i32_0, %c0_i32_1 : i32, i32, i32
  }
  func.func @transform_2(%arg0: i32, %arg1: i32) -> (i32, i32) {
    %c0_i32 = arith.constant 0 : i32
    %c0_i32_0 = arith.constant 0 : i32
    %c0_i32_1 = arith.constant 0 : i32
    return %c0_i32, %c0_i32_0 : i32, i32
  }
  func.func @transform_3(%arg0: i32, %arg1: i32) -> (i32, i32) {
    %c0_i32 = arith.constant 0 : i32
    %c0_i32_0 = arith.constant 0 : i32
    %c0_i32_1 = arith.constant 0 : i32
    return %c0_i32, %c0_i32_0 : i32, i32
  }
  func.func @transform_4(%arg0: i32, %arg1: i32) -> (i32, i32) {
    %c0_i32 = arith.constant 0 : i32
    %c0_i32_0 = arith.constant 0 : i32
    %c0_i32_1 = arith.constant 0 : i32
    return %c0_i32, %c0_i32_0 : i32, i32
  }
  func.func @transform_5(%arg0: i32, %arg1: i32) -> (i32, i32) {
    %c0_i32 = arith.constant 0 : i32
    %c0_i32_0 = arith.constant 0 : i32
    %c0_i32_1 = arith.constant 0 : i32
    return %c0_i32, %c0_i32_0 : i32, i32
  }
  func.func @transform_6(%arg0: i32, %arg1: i32) -> (i32, i32) {
    %c0_i32 = arith.constant 0 : i32
    %c0_i32_0 = arith.constant 0 : i32
    %c0_i32_1 = arith.constant 0 : i32
    return %c0_i32, %c0_i32_0 : i32, i32
  }
  func.func @transform_7(%arg0: i32, %arg1: i32) -> (i32, i32) {
    %c0_i32 = arith.constant 0 : i32
    %c0_i32_0 = arith.constant 0 : i32
    %c0_i32_1 = arith.constant 0 : i32
    return %c0_i32, %c0_i32_0 : i32, i32
  }
  func.func @transform_8(%arg0: i32, %arg1: i32) -> (i32, i32) {
    %c0_i32 = arith.constant 0 : i32
    %c0_i32_0 = arith.constant 0 : i32
    %c0_i32_1 = arith.constant 0 : i32
    return %c0_i32, %c0_i32_0 : i32, i32
  }
  func.func @transform_9(%arg0: i32, %arg1: i32) -> (i32, i32, i32) {
    %c0_i32 = arith.constant 0 : i32
    %c0_i32_0 = arith.constant 0 : i32
    return %arg0, %c0_i32, %arg1 : i32, i32, i32
  }
}

</mosaic_0001>

<bundles_post_ra>
// kernel: grasp_classifier_forward.1
= control target key start
LH: loop header
LB: loop body
LE: loop exit
PB: predicated region body
PF: predicated region fallthrough
CT: control target
= control target key end

     0   :  { %s5309_s0 = inlined_call_operand.vmem [shape: f32[2,32,16,8], index: 0, kind: input, shape index: {}]   ;;  %s5310_s1 = inlined_call_operand.vmem [shape: bf16[32,32,8], index: 1, kind: input, shape index: {}]   ;;  %s5311_s2 = inlined_call_operand.vmem [shape: f32[32,1], index: 2, kind: input, shape index: {}]   ;;  %s5312_s3 = inlined_call_operand.vmem [shape: bf16[512,32], index: 3, kind: input, shape index: {}]   ;;  %s5313_s4 = inlined_call_operand.vmem [shape: f32[512,1], index: 4, kind: input, shape index: {}]   ;;  %s5314_s5 = inlined_call_operand.vmem [shape: bf16[256,512], index: 5, kind: input, shape index: {}]   ;;  %s5315_s6 = inlined_call_operand.vmem [shape: f32[256,1], index: 6, kind: input, shape index: {}]   ;;  %s5316_s7 = inlined_call_operand.vmem [shape: f32[256,1], index: 7, kind: input, shape index: {}]   ;;  %s5317_s8 = inlined_call_operand.<no memory space> [shape: f32[1,1], index: 8, kind: input, shape index: {}]   ;;  %s5318_s9 = inlined_call_operand.hbm [shape: f32[2,1,16], index: 9, kind: output, shape index: {}]  }
   0x1   :  { %5320 = sst [smem:[#allocation46_spill]] %s5309_s0  ;;  %v14_v0 = vstv %s5317_s8 }
   0x2   :  { %15 = vst [vmem:[#allocation3] sm:$0x1] %v14_v0 }
   0x3   :  { %16 = vsyncpa [#allocation5], 0 }
   0x4   :  { %18 = vsyncpa [#allocation5 + $0x1], 0  ;;  %s3763_s11 = smov 0   ;;  %s3765_s12 = smov 0  }
   0x5   :  { %s3767_s13 = smov 0   ;;  %s3769_s14 = smov 0  }
   0x6   :  { %s3771_s15 = smov 0   ;;  %s3773_s16 = smov 0  }
   0x7 LB: > { %s2933_s8 = sadd.s32 4294967295, %s3701_s16   ;;  %s2934_s17 = sadd.s32 4294967294, %s3701_s16   ;;  %s3701_s16 = sphi %s3773_s16, %s24_s16   ;;  %s3697_s15 = sphi %s3771_s15, %s5478_s15   ;;  %s3693_s14 = sphi %s3769_s14, %s5477_s14   ;;  %s3689_s13 = sphi %s3767_s13, %s5476_s13   ;;  %s3685_s12 = sphi %s3765_s12, %s5475_s12   ;;  %s3681_s11 = sphi %s3763_s11, %s5474_s11  }
   0x8   : > { %s36_s18 = sadd.s32 1, %s3697_s15  ;;  %s241_s19 = sadd.s32 1, %s3689_s13 }
   0x9   : > { %p38_p0 = scmp.ge.s32.totalorder %s36_s18, 2  ;;  %p251_p1 = scmp.ne.s32.totalorder %s3689_s13, %s3685_s12 }
   0xa   : > { %p252_p2 = scmp.eq.s32.totalorder %s2933_s8, 1  ;;  %p257_p3 = scmp.ne.s32.totalorder %s3685_s12, %s3681_s11 }
   0xb   : > { %s5480_s18 = smov (%p38_p0, %s36_s18), 0  ;;  %p258_p5 = scmp.eq.s32.totalorder %s2934_s17, 1 }
   0xc   : > { %p3803_p4 = por %p252_p2, %p251_p1  ;;  %s236_s21 = ssub.s32 %s3697_s15, %s5480_s18 }
   0xd   : > { %p2937_p6 = scmp.ge.s32.totalorder %s3701_s16, 1  ;;  %p239_p7 = scmp.eq.s32.totalorder %s236_s21, 0 }
   0xe   : > { %p3810_p8 = por %p258_p5, %p257_p3  ;;  %p313_p9 = scmp.lt.s32.totalorder %s3701_s16, 3 }
   0xf   : > { %s3816_s23 = scalar_select %p239_p7, %s3689_s13, %s241_s19  }
  0x10   : > { %p314_p10 = pnand %p2937_p6, %p313_p9 }
  0x12   : > { %317 = sbr.rel (%p314_p10) target bundleno = 955 (0x3bb), region = 56 }
  0x17   : > { %s5319_s24 = sand.u32 1, %s3685_s12   ;;  %p353_p11 = scmp.lt.s32.totalorder %s3693_s14, 1  ;;  %vm363_vm0 = vcmask 130048   ;;  %v3707_v1 = vmov 0.0  }
  0x18   : > { %364 = vst.msk [vmem:[#allocation2] sm:$0xff] %vm363_vm0, %v3707_v1  ;;  %365 = vst.msk [vmem:[#allocation2 + $0x8] sm:$0xff] %vm363_vm0, %v3707_v1  ;;  %s5323_s0 = sld [smem:[#allocation46_spill]]  ;;  %s3832_s30 = scalar_lea.vmem [#allocation4], %s5319_s24 }
  0x19   : > { %366 = vst.msk [vmem:[#allocation2 + $0x10] sm:$0xff] %vm363_vm0, %v3707_v1  ;;  %367 = vst.msk [vmem:[#allocation2 + $0x18] sm:$0xff] %vm363_vm0, %v3707_v1  ;;  %s354_s25 = scalar_select %p353_p11, %s3693_s14, 1 }
  0x1a   : > { %s3834_s10 = smov 0  }
  0x1b   : > { %s3078_s26 = sshll.u32 %s354_s25, 9 }
  0x1e   : > { %s3828_s29 = scalar_lea.vmem %s5323_s0, %s3078_s26 }
  0x1f LB: >> { %s2940_s8 = sshll.u32 %s3705_s10, 4  ;;  %vm400_vm1 = vcmask 64512   ;;  %v386_v10 = vld [vmem:[#allocation2] sm:$0xff]  ;;  %v387_v16 = vld [vmem:[#allocation2 + $0x8] sm:$0xff]  ;;  %s373_s10 = sadd.s32 1, %s3705_s10   ;;  %s3705_s10 = sphi %s3834_s10, %s373_s10  }
  0x20   : >> { %s375_s17 = scalar_lea.vmem %s3828_s29, %s2940_s8  ;;  %s381_s25 = scalar_lea.vmem %s5310_s1, %s2940_s8  ;;  %v388_v8 = vld [vmem:[#allocation2 + $0x10] sm:$0xff]  ;;  %v389_v13 = vld [vmem:[#allocation2 + $0x18] sm:$0xff] }
  0x21   : >> { %v376_v2 = vld [vmem:[%s375_s17] sm:$0xff]  ;;  %v377_v3 = vld [vmem:[%s375_s17 + $0x8] sm:$0xff]  ;;  %p370_p12 = scmp.ge.s32.totalorder %s373_s10, 32  }
  0x22   : >> { %v378_v4 = vpack.c.bf16 %v377_v3, %v376_v2  ;;  %v3485_v5 = vld [vmem:[%s381_s25] sm:$0xff]   ;;  %v3486_v7 = vld [vmem:[%s381_s25 + $0x8] sm:$0xff]   ;;  %v473_v20 = vld [vmem:[%s5311_s2 + $0x10] sm:$0xff] (%p370_p12)  ;;  %v3708_v22 = vmov (%p370_p12), 0   ;;  %vm1113_vm2 = vcmask (%p370_p12), 261120   ;;  %s3075_s21 = sshll.u32 (%p370_p12), %s3693_s14, 4 }
  0x23   : >> { %3343 = vmatprep.mubr.msk.bf16.mxu0 %vm400_vm1, %v3485_v5  ;;  %v471_v21 = vld [vmem:[%s5311_s2] sm:$0xff] (%p370_p12)  ;;  %3488 = vset.pattern.permute.xlu1 (%p370_p12), %v3708_v22  ;;  %v474_v23 = vld [vmem:[%s5311_s2 + $0x18] sm:$0xff] (%p370_p12)  ;;  %v472_v24 = vld [vmem:[%s5311_s2 + $0x8] sm:$0xff] (%p370_p12)  ;;  %s2854_s10 = sshll.u32 (%p370_p12), %s3832_s30, 4  ;;  %vm2838_vm4 = vcmask (%p370_p12), 122880   ;;  %s2852_s26 = scalar_lea.hbm (%p370_p12), %s5318_s9, %s3075_s21  ;;  %s2855_s10 = int_to_ptr.vmem [resolvable:$true] %s2854_s10 }
  0x24   : >> { %3419 = vmatprep.subr.msk.bf16.mxu0 %vm400_vm1, %v378_v4  ;;  %v408_v6 = vsel %vm400_vm1, %v378_v4, 0  ;;  %3487 = vset.pattern.permute.xlu0 (%p370_p12), %v3708_v22  ;;  %v569_v25 = vld [vmem:[%s5313_s4] sm:$0xff] (%p370_p12)  ;;  %v570_v26 = vld [vmem:[%s5313_s4 + $0x8] sm:$0xff] (%p370_p12)  ;;  %v571_v27 = vld [vmem:[%s5313_s4 + $0x10] sm:$0xff] (%p370_p12)  ;;  %s5473_s27 = sand.u32 (%p370_p12), 1, %s3685_s12   ;;  %s3621_s8 = scalar_lea.vmem (%p370_p12), %s2855_s10, 16 }
  0x25   : >> { %3342 = vmatpush3.bf16.xpose.msra.mxu0 %v408_v6  ;;  %487 = vperm.xlu0 (%p370_p12), %3487, %v473_v20   ;;  %v572_v28 = vld [vmem:[%s5313_s4 + $0x18] sm:$0xff] (%p370_p12)  ;;  %v573_v29 = vld [vmem:[%s5313_s4 + $0x20] sm:$0xff] (%p370_p12)  ;;  %v574_v30 = vld [vmem:[%s5313_s4 + $0x28] sm:$0xff] (%p370_p12)  ;;  %s2841_s28 = scalar_lea.sflag (%p370_p12), [#allocation5], %s5473_s27  ;;  %p3622_p13 = scmp.ne.s32.totalorder (%p370_p12), %s2855_s10, %s3621_s8 }
  0x26   : > { %477 = vperm.xlu1 (%p370_p12), %3488, %v471_v21   ;;  %v575_v31 = vld [vmem:[%s5313_s4 + $0x30] sm:$0xff] (%p370_p12)  ;;  %v576_v32 = vld [vmem:[%s5313_s4 + $0x38] sm:$0xff] (%p370_p12)  ;;  %v3489_v37 = vld [vmem:[%s5312_s3] sm:$0xff] (%p370_p12)   ;;  %s3709_s14 = smov (%p370_p12), [#allocation4]  }
  0x27   : > { %v599_v33 = vld [vmem:[%s5313_s4 + $0xf0] sm:$0xff] (%p370_p12)  ;;  %v600_v34 = vld [vmem:[%s5313_s4 + $0xf8] sm:$0xff] (%p370_p12)  ;;  %v3490_v38 = vld [vmem:[%s5312_s3 + $0x80] sm:$0xff] (%p370_p12)   ;;  %p3623_p0 = pnand (%p370_p12), %p3622_p13, %p3803_p4  ;;  %s3625_s0 = sshll.u32 (%p370_p12), %s3709_s14, 4  ;;  %s3626_s0 = int_to_ptr.vmem [resolvable:$false] %s3625_s0 }
  0x28   : > { %v583_v35 = vld [vmem:[%s5313_s4 + $0x70] sm:$0xff] (%p370_p12)  ;;  %v584_v36 = vld [vmem:[%s5313_s4 + $0x78] sm:$0xff] (%p370_p12)  ;;  %3383 = vmatprep.mubr.msk.bf16.mxu1 (%p370_p12), %vm1113_vm2, %v3490_v38  ;;  %v597_v43 = vld [vmem:[%s5313_s4 + $0xe0] sm:$0xff] (%p370_p12)  ;;  %s3627_s24 = scalar_lea.vmem (%p370_p12), %s3626_s0, 32  ;;  %p3628_p2 = scmp.lt.s32.totalorder (%p370_p12), %s2855_s10, %s3626_s0 }
  0x29   : > { %492 = vperm.xlu0 (%p370_p12), %3487, %v474_v23   ;;  %v631_v39 = vld [vmem:[%s5313_s4 + $0x1f0] sm:$0xff] (%p370_p12)  ;;  %v632_v40 = vld [vmem:[%s5313_s4 + $0x1f8] sm:$0xff] (%p370_p12)  ;;  %v598_v44 = vld [vmem:[%s5313_s4 + $0xe8] sm:$0xff] (%p370_p12)  ;;  %p3624_p1 = pneg (%p370_p12), %p3623_p0  ;;  %p3629_p3 = scmp.lt.s32.totalorder (%p370_p12), %s3627_s24, %s3621_s8 }
  0x2a   : > { %482 = vperm.xlu1 (%p370_p12), %3488, %v472_v24   ;;  %v615_v41 = vld [vmem:[%s5313_s4 + $0x170] sm:$0xff] (%p370_p12)  ;;  %v616_v42 = vld [vmem:[%s5313_s4 + $0x178] sm:$0xff] (%p370_p12)  ;;  %v581_v45 = vld [vmem:[%s5313_s4 + $0x60] sm:$0xff] (%p370_p12) }
  0x2b   : > { %v582_v46 = vld [vmem:[%s5313_s4 + $0x68] sm:$0xff] (%p370_p12)  ;;  %v629_v47 = vld [vmem:[%s5313_s4 + $0x1e0] sm:$0xff] (%p370_p12)  ;;  %v595_v51 = vld [vmem:[%s5313_s4 + $0xd0] sm:$0xff] (%p370_p12)  ;;  %p3630_p5 = por (%p370_p12), %p3629_p3, %p3628_p2 }
  0x2c   : >> { %3344 = vmatmul.mubr.msk.bf16.vlgmr.msra.gmra.mxu0 %vm400_vm1, %v3486_v7  ;;  %v630_v48 = vld [vmem:[%s5313_s4 + $0x1e8] sm:$0xff] (%p370_p12)  ;;  %v613_v49 = vld [vmem:[%s5313_s4 + $0x160] sm:$0xff] (%p370_p12)  ;;  %v596_v52 = vld [vmem:[%s5313_s4 + $0xd8] sm:$0xff] (%p370_p12) }
  0x2d   : > { %635 = vperm.xlu0 (%p370_p12), %3487, %v569_v25   ;;  %3351 = vmatprep.mubr.msk.bf16.mxu0 (%p370_p12), %vm1113_vm2, %v3489_v37  ;;  %v614_v50 = vld [vmem:[%s5313_s4 + $0x168] sm:$0xff] (%p370_p12)  ;;  %v579_v53 = vld [vmem:[%s5313_s4 + $0x50] sm:$0xff] (%p370_p12)  ;;  %v580_v54 = vld [vmem:[%s5313_s4 + $0x58] sm:$0xff] (%p370_p12)  ;;  %p3631_p6 = pnand (%p370_p12), %p3630_p5, %p3624_p1 }
  0x2e   : > { %640 = vperm.xlu1 (%p370_p12), %3488, %v570_v26   ;;  %v627_v55 = vld [vmem:[%s5313_s4 + $0x1d0] sm:$0xff] (%p370_p12)  ;;  %v628_v56 = vld [vmem:[%s5313_s4 + $0x1d8] sm:$0xff] (%p370_p12)  ;;  %v593_v59 = vld [vmem:[%s5313_s4 + $0xc0] sm:$0xff] (%p370_p12) }
  0x2f   : > { %v611_v57 = vld [vmem:[%s5313_s4 + $0x150] sm:$0xff] (%p370_p12)  ;;  %v612_v58 = vld [vmem:[%s5313_s4 + $0x158] sm:$0xff] (%p370_p12)  ;;  %v594_v60 = vld [vmem:[%s5313_s4 + $0xc8] sm:$0xff] (%p370_p12) }
  0x30   : > { %v577_v61 = vld [vmem:[%s5313_s4 + $0x40] sm:$0xff] (%p370_p12)  ;;  %v578_v62 = vld [vmem:[%s5313_s4 + $0x48] sm:$0xff] (%p370_p12)  ;;  %v591_v3 = vld [vmem:[%s5313_s4 + $0xb0] sm:$0xff] (%p370_p12) }
  0x31   : > { %645 = vperm.xlu0 (%p370_p12), %3487, %v571_v27   ;;  %v625_v63 = vld [vmem:[%s5313_s4 + $0x1c0] sm:$0xff] (%p370_p12)  ;;  %v626_v0 = vld [vmem:[%s5313_s4 + $0x1c8] sm:$0xff] (%p370_p12)  ;;  %v592_v4 = vld [vmem:[%s5313_s4 + $0xb8] sm:$0xff] (%p370_p12) }
  0x32   : > { %650 = vperm.xlu1 (%p370_p12), %3488, %v572_v28   ;;  %v609_v1 = vld [vmem:[%s5313_s4 + $0x140] sm:$0xff] (%p370_p12)  ;;  %v610_v2 = vld [vmem:[%s5313_s4 + $0x148] sm:$0xff] (%p370_p12)  ;;  %v623_v5 = vld [vmem:[%s5313_s4 + $0x1b0] sm:$0xff] (%p370_p12) }
  0x33   : > { %v624_v6 = vld [vmem:[%s5313_s4 + $0x1b8] sm:$0xff] (%p370_p12)  ;;  %v607_v7 = vld [vmem:[%s5313_s4 + $0x130] sm:$0xff] (%p370_p12)  ;;  %v585_v21 = vld [vmem:[%s5313_s4 + $0x80] sm:$0xff] (%p370_p12) }
  0x34   : > { %v604_v20 = vld [vmem:[%s5313_s4 + $0x118] sm:$0xff] (%p370_p12)  ;;  %v586_v22 = vld [vmem:[%s5313_s4 + $0x88] sm:$0xff] (%p370_p12)  ;;  %v601_v37 = vld [vmem:[%s5313_s4 + $0x100] sm:$0xff] (%p370_p12) }
  0x35   : > { %655 = vperm.xlu0 (%p370_p12), %3487, %v573_v29   ;;  %v617_v29 = vld [vmem:[%s5313_s4 + $0x180] sm:$0xff] (%p370_p12)  ;;  %v602_v38 = vld [vmem:[%s5313_s4 + $0x108] sm:$0xff] (%p370_p12) }
  0x36   : > { %660 = vperm.xlu1 (%p370_p12), %3488, %v574_v30   ;;  %v618_v30 = vld [vmem:[%s5313_s4 + $0x188] sm:$0xff] (%p370_p12) }
  0x39   : > { %665 = vperm.xlu0 (%p370_p12), %3487, %v575_v31  }
  0x3a   : > { %670 = vperm.xlu1 (%p370_p12), %3488, %v576_v32  }
  0x3d   : > { %785 = vperm.xlu0 (%p370_p12), %3487, %v599_v33  }
  0x3e   : > { %790 = vperm.xlu1 (%p370_p12), %3488, %v600_v34  }
  0x41   : > { %705 = vperm.xlu0 (%p370_p12), %3487, %v583_v35  }
  0x42   : > { %710 = vperm.xlu1 (%p370_p12), %3488, %v584_v36  }
  0x45   : > { %945 = vperm.xlu0 (%p370_p12), %3487, %v631_v39  }
  0x46   : > { %950 = vperm.xlu1 (%p370_p12), %3488, %v632_v40  }
  0x49   : > { %865 = vperm.xlu0 (%p370_p12), %3487, %v615_v41  }
  0x4a   : > { %870 = vperm.xlu1 (%p370_p12), %3488, %v616_v42  }
  0x4d   : > { %775 = vperm.xlu0 (%p370_p12), %3487, %v597_v43  }
  0x4e   : > { %780 = vperm.xlu1 (%p370_p12), %3488, %v598_v44   ;;  %v1659_v44 = vld [vmem:[%s5315_s6] sm:$0xff] (%p370_p12) }
  0x51   : > { %695 = vperm.xlu0 (%p370_p12), %3487, %v581_v45   ;;  %v1660_v45 = vld [vmem:[%s5315_s6 + $0x8] sm:$0xff] (%p370_p12) }
  0x52   : > { %700 = vperm.xlu1 (%p370_p12), %3488, %v582_v46  }
  0x55   : > { %935 = vperm.xlu0 (%p370_p12), %3487, %v629_v47   ;;  %v1661_v47 = vld [vmem:[%s5315_s6 + $0x10] sm:$0xff] (%p370_p12) }
  0x56   : > { %940 = vperm.xlu1 (%p370_p12), %3488, %v630_v48   ;;  %v1662_v48 = vld [vmem:[%s5315_s6 + $0x18] sm:$0xff] (%p370_p12) }
  0x59   : > { %855 = vperm.xlu0 (%p370_p12), %3487, %v613_v49   ;;  %v3491_v49 = vld [vmem:[%s5312_s3 + $0x8] sm:$0xff] (%p370_p12)  }
  0x5a   : > { %860 = vperm.xlu1 (%p370_p12), %3488, %v614_v50   ;;  %v3492_v50 = vld [vmem:[%s5312_s3 + $0x88] sm:$0xff] (%p370_p12)  }
  0x5d   : > { %765 = vperm.xlu0 (%p370_p12), %3487, %v595_v51   ;;  %v3493_v51 = vld [vmem:[%s5312_s3 + $0x10] sm:$0xff] (%p370_p12)  }
  0x5e   : > { %770 = vperm.xlu1 (%p370_p12), %3488, %v596_v52   ;;  %v3494_v52 = vld [vmem:[%s5312_s3 + $0x90] sm:$0xff] (%p370_p12)  }
  0x61   : > { %685 = vperm.xlu0 (%p370_p12), %3487, %v579_v53   ;;  %v1663_v53 = vld [vmem:[%s5315_s6 + $0x20] sm:$0xff] (%p370_p12) }
  0x62   : > { %690 = vperm.xlu1 (%p370_p12), %3488, %v580_v54   ;;  %v1664_v54 = vld [vmem:[%s5315_s6 + $0x28] sm:$0xff] (%p370_p12) }
  0x65   : > { %925 = vperm.xlu0 (%p370_p12), %3487, %v627_v55   ;;  %v1665_v55 = vld [vmem:[%s5315_s6 + $0x30] sm:$0xff] (%p370_p12) }
  0x66   : > { %930 = vperm.xlu1 (%p370_p12), %3488, %v628_v56   ;;  %v1666_v56 = vld [vmem:[%s5315_s6 + $0x38] sm:$0xff] (%p370_p12) }
  0x69   : > { %845 = vperm.xlu0 (%p370_p12), %3487, %v611_v57   ;;  %v3495_v57 = vld [vmem:[%s5312_s3 + $0x18] sm:$0xff] (%p370_p12)  }
  0x6a   : > { %850 = vperm.xlu1 (%p370_p12), %3488, %v612_v58   ;;  %v3496_v58 = vld [vmem:[%s5312_s3 + $0x98] sm:$0xff] (%p370_p12)  }
  0x6d   : > { %755 = vperm.xlu0 (%p370_p12), %3487, %v593_v59   ;;  %v3497_v59 = vld [vmem:[%s5312_s3 + $0x20] sm:$0xff] (%p370_p12)  }
  0x6e   : > { %760 = vperm.xlu1 (%p370_p12), %3488, %v594_v60   ;;  %v3498_v60 = vld [vmem:[%s5312_s3 + $0xa0] sm:$0xff] (%p370_p12)  }
  0x71   : > { %675 = vperm.xlu0 (%p370_p12), %3487, %v577_v61   ;;  %v1667_v61 = vld [vmem:[%s5315_s6 + $0x40] sm:$0xff] (%p370_p12) }
  0x72   : > { %680 = vperm.xlu1 (%p370_p12), %3488, %v578_v62   ;;  %v1668_v62 = vld [vmem:[%s5315_s6 + $0x48] sm:$0xff] (%p370_p12) }
  0x75   : > { %915 = vperm.xlu0 (%p370_p12), %3487, %v625_v63  }
  0x76   : > { %920 = vperm.xlu1 (%p370_p12), %3488, %v626_v0  }
  0x79   : > { %835 = vperm.xlu0 (%p370_p12), %3487, %v609_v1   ;;  %v1669_v1 = vld [vmem:[%s5315_s6 + $0x50] sm:$0xff] (%p370_p12) }
  0x7a   : > { %840 = vperm.xlu1 (%p370_p12), %3488, %v610_v2   ;;  %v1670_v2 = vld [vmem:[%s5315_s6 + $0x58] sm:$0xff] (%p370_p12) }
  0x7d   : > { %745 = vperm.xlu0 (%p370_p12), %3487, %v591_v3   ;;  %v3499_v3 = vld [vmem:[%s5312_s3 + $0x28] sm:$0xff] (%p370_p12)  }
  0x7e   : > { %750 = vperm.xlu1 (%p370_p12), %3488, %v592_v4   ;;  %v3500_v4 = vld [vmem:[%s5312_s3 + $0xa8] sm:$0xff] (%p370_p12)  }
  0x81   : > { %905 = vperm.xlu0 (%p370_p12), %3487, %v623_v5   ;;  %v3501_v5 = vld [vmem:[%s5312_s3 + $0x30] sm:$0xff] (%p370_p12)  }
  0x82   : > { %910 = vperm.xlu1 (%p370_p12), %3488, %v624_v6   ;;  %v3502_v6 = vld [vmem:[%s5312_s3 + $0xb0] sm:$0xff] (%p370_p12)  }
  0x85   : > { %825 = vperm.xlu0 (%p370_p12), %3487, %v607_v7  }
  0xa0   : > { %v488_v23 = vpop.permute.xlu0 (%p370_p12), %487 }
  0xa1   : > { %v478_v25 = vpop.permute.xlu1 (%p370_p12), %477 }
  0xa4   : > { %v493_v33 = vpop.permute.xlu0 (%p370_p12), %492 }
  0xa5   : > { %v483_v34 = vpop.permute.xlu1 (%p370_p12), %482 }
  0xa8   : > { %v4123_v63 = vpop.permute.xlu0 (%p370_p12), %635 }
  0xa9   : > { %v4127_v0 = vpop.permute.xlu1 (%p370_p12), %640 }
  0xac   : > { %v4147_v7 = vpop.permute.xlu0 (%p370_p12), %645 }
  0xec   : >> { %v3345_v9 = vpop.f32.mrf.mxu0 }
  0xed   : >> { %v461_v11 = vadd.f32 %v3345_v9, %v388_v8  ;;  %v608_v8 = vld [vmem:[%s5313_s4 + $0x138] sm:$0xff] (%p370_p12)  ;;  %v589_v9 = vld [vmem:[%s5313_s4 + $0xa0] sm:$0xff] (%p370_p12) }
  0xee   : >> { %v444_v12 = vpop.f32.mrf.mxu0  ;;  %830 = vperm.xlu1 (%p370_p12), %3488, %v608_v8   ;;  %735 = vperm.xlu0 (%p370_p12), %3487, %v589_v9   ;;  %v1671_v8 = vld [vmem:[%s5315_s6 + $0x60] sm:$0xff] (%p370_p12)  ;;  %v1672_v9 = vld [vmem:[%s5315_s6 + $0x68] sm:$0xff] (%p370_p12) }
  0xef   : >> { %465 = vst.msk [vmem:[#allocation2 + $0x10] sm:$0xff] %vm363_vm0, %v461_v11  ;;  %v459_v14 = vadd.f32 %v444_v12, %v386_v10  ;;  %v590_v10 = vld [vmem:[%s5313_s4 + $0xa8] sm:$0xff] (%p370_p12)  ;;  %v621_v11 = vld [vmem:[%s5313_s4 + $0x1a0] sm:$0xff] (%p370_p12) }
  0xf0   : >> { %v3346_v15 = vpop.f32.mrf.mxu0  ;;  %v622_v12 = vld [vmem:[%s5313_s4 + $0x1a8] sm:$0xff] (%p370_p12) }
  0xf1   : >> { %463 = vst.msk [vmem:[#allocation2] sm:$0xff] %vm363_vm0, %v459_v14  ;;  %v462_v17 = vadd.f32 %v3346_v15, %v389_v13  ;;  %v605_v13 = vld [vmem:[%s5313_s4 + $0x120] sm:$0xff] (%p370_p12)  ;;  %v606_v14 = vld [vmem:[%s5313_s4 + $0x128] sm:$0xff] (%p370_p12)  ;;  %v587_v15 = vld [vmem:[%s5313_s4 + $0x90] sm:$0xff] (%p370_p12) }
  0xf2   : >> { %v447_v18 = vpop.f32.mrf.mxu0  ;;  %740 = vperm.xlu1 (%p370_p12), %3488, %v590_v10   ;;  %895 = vperm.xlu0 (%p370_p12), %3487, %v621_v11   ;;  %v4157_v10 = vpop.permute.xlu1 (%p370_p12), %650  ;;  %v1673_v11 = vld [vmem:[%s5315_s6 + $0x70] sm:$0xff] (%p370_p12) }
  0xf3   : >> { %466 = vst.msk [vmem:[#allocation2 + $0x18] sm:$0xff] %vm363_vm0, %v462_v17  ;;  %v460_v19 = vadd.f32 %v447_v18, %v387_v16  ;;  %v588_v16 = vld [vmem:[%s5313_s4 + $0x98] sm:$0xff] (%p370_p12)  ;;  %v619_v17 = vld [vmem:[%s5313_s4 + $0x190] sm:$0xff] (%p370_p12) }
  0xf4   : > { %v620_v18 = vld [vmem:[%s5313_s4 + $0x198] sm:$0xff] (%p370_p12) }
  0xf5   : >> { %464 = vst.msk [vmem:[#allocation2 + $0x8] sm:$0xff] %vm363_vm0, %v460_v19  ;;  %v603_v19 = vld [vmem:[%s5313_s4 + $0x110] sm:$0xff] (%p370_p12) }
  0xf6   : > { %372 = sbr.rel (!%p370_p12) target bundleno = 31 (0x1f), region = 100  ;;  %900 = vperm.xlu1 (%p370_p12), %3488, %v622_v12   ;;  %815 = vperm.xlu0 (%p370_p12), %3487, %v605_v13   ;;  %v469_v24 = vld [vmem:[#allocation2 + $0x10] sm:$0xff] (%p370_p12)  ;;  %v1674_v12 = vld [vmem:[%s5315_s6 + $0x78] sm:$0xff] (%p370_p12) }
  0xf7   : > { %v497_v31 = vadd.f32 (%p370_p12), %v488_v23, %v469_v24  ;;  %v3503_v13 = vld [vmem:[%s5312_s3 + $0x38] sm:$0xff] (%p370_p12)   ;;  %v3507_v24 = vld [vmem:[%s5312_s3 + $0x48] sm:$0xff] (%p370_p12)  }
  0xf8   : > { %v467_v26 = vld [vmem:[#allocation2] sm:$0xff] (%p370_p12)  ;;  %v1678_v23 = vld [vmem:[%s5315_s6 + $0x98] sm:$0xff] (%p370_p12) }
  0xf9   : > { %v495_v32 = vadd.f32 (%p370_p12), %v478_v25, %v467_v26  ;;  %v501_v39 = vmax.f32 (%p370_p12), %v497_v31, 0.0  ;;  %v3508_v25 = vld [vmem:[%s5312_s3 + $0xc8] sm:$0xff] (%p370_p12)  }
  0xfa   : > { %820 = vperm.xlu1 (%p370_p12), %3488, %v606_v14   ;;  %725 = vperm.xlu0 (%p370_p12), %3487, %v587_v15   ;;  %v470_v27 = vld [vmem:[#allocation2 + $0x18] sm:$0xff] (%p370_p12)  ;;  %v4173_v15 = vpop.permute.xlu0 (%p370_p12), %655 }
  0xfb   : > { %v498_v35 = vadd.f32 %v493_v33, %v470_v27  ;;  %v499_v41 = vmax.f32 %v495_v32, 0.0  ;;  %v3504_v14 = vld [vmem:[%s5312_s3 + $0xb8] sm:$0xff]   ;;  %v3509_v27 = vld [vmem:[%s5312_s3 + $0x50] sm:$0xff]  }
  0xfc   : > { %v468_v28 = vld [vmem:[#allocation2 + $0x8] sm:$0xff]  ;;  %v2527_v33 = vld [vmem:[%s5316_s7 + $0x10] sm:$0xff] }
  0xfd   : > { %v496_v36 = vadd.f32 %v483_v34, %v468_v28  ;;  %v502_v40 = vmax.f32 %v498_v35, 0.0  ;;  %v3510_v28 = vld [vmem:[%s5312_s3 + $0xd0] sm:$0xff]   ;;  %v2528_v34 = vld [vmem:[%s5316_s7 + $0x18] sm:$0xff] }
  0xfe   : > { %730 = vperm.xlu1 %3488, %v588_v16   ;;  %885 = vperm.xlu0 %3487, %v619_v17   ;;  %v3505_v16 = vld [vmem:[%s5312_s3 + $0x40] sm:$0xff]   ;;  %v3511_v35 = vld [vmem:[%s5312_s3 + $0x58] sm:$0xff]  }
  0xff   : > { %v500_v42 = vmax.f32 %v496_v36, 0.0  ;;  %v504_v43 = vpack.c.bf16 %v502_v40, %v501_v39  ;;  %v3506_v17 = vld [vmem:[%s5312_s3 + $0xc0] sm:$0xff]   ;;  %v3512_v36 = vld [vmem:[%s5312_s3 + $0xd8] sm:$0xff]  }
 0x100   : > { %v2529_v40 = vld [vmem:[%s5316_s7 + $0x20] sm:$0xff] }
 0x101   : > { %3347 = vmatprep.subr.bf16.mxu0 %v504_v43  ;;  %3415 = vmatprep.subr.bf16.mxu1 %v504_v43  ;;  %v503_v46 = vpack.c.bf16 %v500_v42, %v499_v41  ;;  %v2530_v41 = vld [vmem:[%s5316_s7 + $0x28] sm:$0xff] }
 0x102   : > { %890 = vperm.xlu1 %3488, %v620_v18   ;;  %805 = vperm.xlu0 %3487, %v603_v19   ;;  %v4181_v18 = vpop.permute.xlu1 %660  ;;  %v1675_v19 = vld [vmem:[%s5315_s6 + $0x80] sm:$0xff] }
 0x103   : > { %3348 = vmatpush3.bf16.msra.mxu0 %v504_v43  ;;  %3417 = vmatpush3.bf16.msra.mxu1 %v504_v43  ;;  %v2531_v43 = vld [vmem:[%s5316_s7 + $0x30] sm:$0xff] }
 0x104   : > { %3349 = vmatprep.subr.bf16.mxu0 %v503_v46  ;;  %3416 = vmatprep.subr.bf16.mxu1 %v503_v46 }
 0x106   : > { %810 = vperm.xlu1 %3488, %v604_v20   ;;  %715 = vperm.xlu0 %3487, %v585_v21   ;;  %v1676_v20 = vld [vmem:[%s5315_s6 + $0x88] sm:$0xff]  ;;  %v4193_v21 = vpop.permute.xlu0 %665  ;;  %v4207_v26 = vpop.permute.xlu1 %670 }
 0x107   : > { %3350 = vmatpush3.bf16.msra.mxu0 %v503_v46  ;;  %3418 = vmatpush3.bf16.msra.mxu1 %v503_v46  ;;  %v3516_v46 = vld [vmem:[%s5312_s3 + $0xe8] sm:$0xff]  }
 0x10a   : > { %720 = vperm.xlu1 %3488, %v586_v22   ;;  %875 = vperm.xlu0 %3487, %v617_v29   ;;  %v1677_v22 = vld [vmem:[%s5315_s6 + $0x90] sm:$0xff]  ;;  %v2525_v29 = vld [vmem:[%s5316_s7] sm:$0xff]  ;;  %v4223_v31 = vpop.permute.xlu0 %785  ;;  %v4227_v32 = vpop.permute.xlu1 %790 }
 0x10b   : > { %3352 = vmatmul.mubr.msk.bf16.vlgmr.msra.gmra.mxu0 %vm1113_vm2, %v3491_v49  ;;  %3384 = vmatmul.mubr.msk.bf16.vlgmr.msra.gmra.mxu1 %vm1113_vm2, %v3492_v50  ;;  %v3518_v49 = vld [vmem:[%s5312_s3 + $0xf0] sm:$0xff]  }
 0x10c   : > { %3355 = vmatprep.mubr.msk.bf16.mxu0 %vm1113_vm2, %v3493_v51  ;;  %3387 = vmatprep.mubr.msk.bf16.mxu1 %vm1113_vm2, %v3494_v52  ;;  %v2533_v51 = vld [vmem:[%s5316_s7 + $0x40] sm:$0xff]  ;;  %v2534_v52 = vld [vmem:[%s5316_s7 + $0x48] sm:$0xff] }
 0x10e   : > { %880 = vperm.xlu1 %3488, %v618_v30   ;;  %795 = vperm.xlu0 %3487, %v601_v37   ;;  %v2526_v30 = vld [vmem:[%s5316_s7 + $0x8] sm:$0xff]  ;;  %v3513_v37 = vld [vmem:[%s5312_s3 + $0x60] sm:$0xff]   ;;  %v4247_v39 = vpop.permute.xlu0 %705  ;;  %v4257_v42 = vpop.permute.xlu1 %710 }
 0x112   : > { %800 = vperm.xlu1 %3488, %v602_v38   ;;  %1693 = vperm.xlu0 %3487, %v1659_v44   ;;  %v3514_v38 = vld [vmem:[%s5312_s3 + $0xe0] sm:$0xff]   ;;  %v2532_v44 = vld [vmem:[%s5316_s7 + $0x38] sm:$0xff]  ;;  %v4281_v50 = vpop.permute.xlu1 %950 }
 0x113   : > { %3356 = vmatmul.mubr.msk.bf16.gmra.mxu0 %vm1113_vm2, %v3495_v57  ;;  %3388 = vmatmul.mubr.msk.bf16.gmra.mxu1 %vm1113_vm2, %v3496_v58  ;;  %v3520_v57 = vld [vmem:[%s5312_s3 + $0xf8] sm:$0xff]  }
 0x114   : > { %3359 = vmatprep.mubr.msk.bf16.mxu0 %vm1113_vm2, %v3497_v59  ;;  %3391 = vmatprep.mubr.msk.bf16.mxu1 %vm1113_vm2, %v3498_v60  ;;  %v2537_v59 = vld [vmem:[%s5316_s7 + $0x60] sm:$0xff]  ;;  %v2538_v60 = vld [vmem:[%s5316_s7 + $0x68] sm:$0xff] }
 0x116   : > { %1698 = vperm.xlu1 %3488, %v1660_v45   ;;  %1703 = vperm.xlu0 %3487, %v1661_v47   ;;  %v3515_v45 = vld [vmem:[%s5312_s3 + $0x68] sm:$0xff]   ;;  %v4273_v47 = vpop.permute.xlu0 %945  ;;  %v4307_v58 = vpop.permute.xlu1 %870 }
 0x11a   : > { %1708 = vperm.xlu1 %3488, %v1662_v48   ;;  %1713 = vperm.xlu0 %3487, %v1663_v53   ;;  %v3517_v48 = vld [vmem:[%s5312_s3 + $0x70] sm:$0xff]   ;;  %v4293_v53 = vpop.permute.xlu0 %865 }
 0x11b   : > { %3360 = vmatmul.mubr.msk.bf16.gmra.mxu0 %vm1113_vm2, %v3499_v3  ;;  %3392 = vmatmul.mubr.msk.bf16.gmra.mxu1 %vm1113_vm2, %v3500_v4  ;;  %v2541_v4 = vld [vmem:[%s5316_s7 + $0x80] sm:$0xff] }
 0x11c   : > { %3363 = vmatprep.mubr.msk.bf16.mxu0 %vm1113_vm2, %v3501_v5  ;;  %3395 = vmatprep.mubr.msk.bf16.mxu1 %vm1113_vm2, %v3502_v6  ;;  %v1679_v5 = vld [vmem:[%s5315_s6 + $0xa0] sm:$0xff] }
 0x11e   : > { %1718 = vperm.xlu1 %3488, %v1664_v54   ;;  %1723 = vperm.xlu0 %3487, %v1665_v55   ;;  %v2535_v54 = vld [vmem:[%s5316_s7 + $0x50] sm:$0xff]  ;;  %v2536_v55 = vld [vmem:[%s5316_s7 + $0x58] sm:$0xff] }
 0x122   : > { %1728 = vperm.xlu1 %3488, %v1666_v56   ;;  %1733 = vperm.xlu0 %3487, %v1667_v61   ;;  %v3519_v56 = vld [vmem:[%s5312_s3 + $0x78] sm:$0xff]   ;;  %v4317_v61 = vpop.permute.xlu0 %775 }
 0x123   : > { %3364 = vmatmul.mubr.msk.bf16.gmra.mxu0 %vm1113_vm2, %v3503_v13  ;;  %3396 = vmatmul.mubr.msk.bf16.gmra.mxu1 %vm1113_vm2, %v3504_v14  ;;  %v2543_v13 = vld [vmem:[%s5316_s7 + $0x90] sm:$0xff] }
 0x124   : > { %3367 = vmatprep.mubr.msk.bf16.mxu0 %vm1113_vm2, %v3505_v16  ;;  %3399 = vmatprep.mubr.msk.bf16.mxu1 %vm1113_vm2, %v3506_v17  ;;  %v1681_v14 = vld [vmem:[%s5315_s6 + $0xb0] sm:$0xff]  ;;  %v2544_v17 = vld [vmem:[%s5316_s7 + $0x98] sm:$0xff] }
 0x126   : > { %1738 = vperm.xlu1 %3488, %v1668_v62   ;;  %1743 = vperm.xlu0 %3487, %v1669_v1   ;;  %v4319_v62 = vpop.permute.xlu1 %780  ;;  %v2539_v1 = vld [vmem:[%s5316_s7 + $0x70] sm:$0xff]  ;;  %v4327_v3 = vpop.permute.xlu0 %695 }
 0x12a   : > { %1748 = vperm.xlu1 %3488, %v1670_v2   ;;  %1753 = vperm.xlu0 %3487, %v1671_v8   ;;  %v2540_v2 = vld [vmem:[%s5316_s7 + $0x78] sm:$0xff]  ;;  %v4335_v6 = vpop.permute.xlu1 %700  ;;  %v2542_v8 = vld [vmem:[%s5316_s7 + $0x88] sm:$0xff] }
 0x12b   : > { %3368 = vmatmul.mubr.msk.bf16.gmra.mxu0 %vm1113_vm2, %v3507_v24  ;;  %3400 = vmatmul.mubr.msk.bf16.gmra.mxu1 %vm1113_vm2, %v3508_v25 }
 0x12c   : > { %3371 = vmatprep.mubr.msk.bf16.mxu0 %vm1113_vm2, %v3509_v27  ;;  %3403 = vmatprep.mubr.msk.bf16.mxu1 %vm1113_vm2, %v3510_v28  ;;  %v2546_v27 = vld [vmem:[%s5316_s7 + $0xa8] sm:$0xff] }
 0x12d   : > { %v1684_v28 = vld [vmem:[%s5315_s6 + $0xc8] sm:$0xff] }
 0x12e   : > { %1758 = vperm.xlu1 %3488, %v1672_v9   ;;  %1763 = vperm.xlu0 %3487, %v1673_v11   ;;  %v1680_v9 = vld [vmem:[%s5315_s6 + $0xa8] sm:$0xff]  ;;  %v4343_v11 = vpop.permute.xlu0 %935 }
 0x132   : > { %1768 = vperm.xlu1 %3488, %v1674_v12   ;;  %1773 = vperm.xlu0 %3487, %v1675_v19   ;;  %v4345_v12 = vpop.permute.xlu1 %940  ;;  %v4353_v16 = vpop.permute.xlu0 %855  ;;  %v1682_v19 = vld [vmem:[%s5315_s6 + $0xb8] sm:$0xff] }
 0x133   : > { %3372 = vmatmul.mubr.msk.bf16.gmra.mxu0 %vm1113_vm2, %v3511_v35  ;;  %3404 = vmatmul.mubr.msk.bf16.gmra.mxu1 %vm1113_vm2, %v3512_v36  ;;  %v2548_v35 = vld [vmem:[%s5316_s7 + $0xb8] sm:$0xff] }
 0x134   : > { %3375 = vmatprep.mubr.msk.bf16.mxu0 %vm1113_vm2, %v3513_v37  ;;  %3407 = vmatprep.mubr.msk.bf16.mxu1 %vm1113_vm2, %v3514_v38  ;;  %v1686_v36 = vld [vmem:[%s5315_s6 + $0xd8] sm:$0xff] }
 0x136   : > { %1778 = vperm.xlu1 %3488, %v1676_v20   ;;  %1783 = vperm.xlu0 %3487, %v1677_v22   ;;  %v4361_v20 = vpop.permute.xlu1 %860  ;;  %v2545_v22 = vld [vmem:[%s5316_s7 + $0xa0] sm:$0xff]  ;;  %v4369_v24 = vpop.permute.xlu0 %765 }
 0x13a   : > { %1788 = vperm.xlu1 %3488, %v1678_v23   ;;  %2559 = vperm.xlu0 %3487, %v2525_v29   ;;  %v1683_v23 = vld [vmem:[%s5315_s6 + $0xc0] sm:$0xff]  ;;  %v4371_v25 = vpop.permute.xlu1 %770  ;;  %v4379_v29 = vpop.permute.xlu0 %685 }
 0x13b   : > { %3376 = vmatmul.mubr.msk.bf16.gmra.mxu0 %vm1113_vm2, %v3515_v45  ;;  %3408 = vmatmul.mubr.msk.bf16.gmra.mxu1 %vm1113_vm2, %v3516_v46  ;;  %v1688_v45 = vld [vmem:[%s5315_s6 + $0xe8] sm:$0xff] }
 0x13c   : > { %3379 = vmatprep.mubr.msk.bf16.mxu0 %vm1113_vm2, %v3517_v48  ;;  %3411 = vmatprep.mubr.msk.bf16.mxu1 %vm1113_vm2, %v3518_v49  ;;  %v2551_v48 = vld [vmem:[%s5316_s7 + $0xd0] sm:$0xff] }
 0x13d   : > { %v1689_v49 = vld [vmem:[%s5315_s6 + $0xf0] sm:$0xff] }
 0x13e   : > { %2564 = vperm.xlu1 %3488, %v2526_v30   ;;  %2569 = vperm.xlu0 %3487, %v2527_v33   ;;  %v2547_v30 = vld [vmem:[%s5316_s7 + $0xb0] sm:$0xff]  ;;  %v4395_v37 = vpop.permute.xlu0 %925 }
 0x13f   : > { %v1685_v33 = vld [vmem:[%s5315_s6 + $0xd0] sm:$0xff] }
 0x142   : > { %2574 = vperm.xlu1 %3488, %v2528_v34   ;;  %2579 = vperm.xlu0 %3487, %v2529_v40   ;;  %v4387_v34 = vpop.permute.xlu1 %690  ;;  %v2549_v40 = vld [vmem:[%s5316_s7 + $0xc0] sm:$0xff] }
 0x143   : > { %3380 = vmatmul.mubr.msk.bf16.gmra.mxu0 %vm1113_vm2, %v3519_v56  ;;  %3412 = vmatmul.mubr.msk.bf16.gmra.mxu1 %vm1113_vm2, %v3520_v57  ;;  %v2553_v57 = vld [vmem:[%s5316_s7 + $0xe0] sm:$0xff] }
 0x146   : > { %2584 = vperm.xlu1 %3488, %v2530_v41   ;;  %2589 = vperm.xlu0 %3487, %v2531_v43   ;;  %v4397_v38 = vpop.permute.xlu1 %930  ;;  %v1687_v41 = vld [vmem:[%s5315_s6 + $0xe0] sm:$0xff]  ;;  %v4405_v43 = vpop.permute.xlu0 %845 }
 0x14a   : > { %2594 = vperm.xlu1 %3488, %v2532_v44   ;;  %2599 = vperm.xlu0 %3487, %v2533_v51   ;;  %v2550_v44 = vld [vmem:[%s5316_s7 + $0xc8] sm:$0xff]  ;;  %v4413_v46 = vpop.permute.xlu1 %850  ;;  %v4421_v51 = vpop.permute.xlu0 %755 }
 0x14b   : > { %5324 = vst [vmem:[#allocation7_spill] sm:$0xff] %v4421_v51 }
 0x14e   : > { %2604 = vperm.xlu1 %3488, %v2534_v52   ;;  %2609 = vperm.xlu0 %3487, %v2535_v54   ;;  %v4423_v52 = vpop.permute.xlu1 %760  ;;  %v2552_v54 = vld [vmem:[%s5316_s7 + $0xd8] sm:$0xff]  ;;  %v4431_v56 = vpop.permute.xlu0 %675 }
 0x152   : > { %2614 = vperm.xlu1 %3488, %v2536_v55   ;;  %2619 = vperm.xlu0 %3487, %v2537_v59   ;;  %v1690_v55 = vld [vmem:[%s5315_s6 + $0xf8] sm:$0xff]  ;;  %v2554_v59 = vld [vmem:[%s5316_s7 + $0xe8] sm:$0xff] }
 0x156   : > { %2624 = vperm.xlu1 %3488, %v2538_v60   ;;  %2629 = vperm.xlu0 %3487, %v2539_v1   ;;  %v4439_v60 = vpop.permute.xlu1 %680  ;;  %v2555_v1 = vld [vmem:[%s5316_s7 + $0xf0] sm:$0xff] }
 0x15a   : > { %2634 = vperm.xlu1 %3488, %v2540_v2   ;;  %2639 = vperm.xlu0 %3487, %v2541_v4   ;;  %v2556_v2 = vld [vmem:[%s5316_s7 + $0xf8] sm:$0xff]  ;;  %v4447_v4 = vpop.permute.xlu0 %915 }
 0x15b   : > { %5325 = vst [vmem:[#allocation8_spill] sm:$0xff] %v4447_v4 }
 0x15e   : > { %1793 = vperm.xlu1 %3488, %v1679_v5   ;;  %2644 = vperm.xlu0 %3487, %v2542_v8   ;;  %v4449_v5 = vpop.permute.xlu1 %920  ;;  %v2818_v8 = vld [vmem:[#allocation3] sm:$0x1] }
 0x162   : > { %1798 = vperm.xlu1 %3488, %v1680_v9   ;;  %2649 = vperm.xlu0 %3487, %v2543_v13   ;;  %v4451_v9 = vpop.permute.xlu0 %835  ;;  %v4453_v13 = vpop.permute.xlu1 %840 }
 0x163   : > { %5326 = vst [vmem:[#allocation9_spill] sm:$0xff] %v4451_v9 }
 0x166   : > { %1803 = vperm.xlu1 %3488, %v1681_v14   ;;  %2654 = vperm.xlu0 %3487, %v2544_v17   ;;  %v4455_v14 = vpop.permute.xlu0 %745  ;;  %v4457_v17 = vpop.permute.xlu1 %750 }
 0x167   : > { %5327 = vst [vmem:[#allocation10_spill] sm:$0xff] %v4455_v14  ;;  %5328 = vst [vmem:[#allocation11_spill] sm:$0xff] %v4457_v17 }
 0x16a   : > { %1808 = vperm.xlu1 %3488, %v1682_v19   ;;  %2659 = vperm.xlu0 %3487, %v2545_v22   ;;  %v4459_v19 = vpop.permute.xlu0 %905  ;;  %v4461_v22 = vpop.permute.xlu1 %910 }
 0x16b   : > { %5329 = vst [vmem:[#allocation12_spill] sm:$0xff] %v4459_v19  ;;  %5330 = vst [vmem:[#allocation13_spill] sm:$0xff] %v4461_v22 }
 0x16e   : > { %1813 = vperm.xlu1 %3488, %v1683_v23   ;;  %2664 = vperm.xlu0 %3487, %v2546_v27   ;;  %v826_v23 = vpop.permute.xlu0 %825  ;;  %v831_v27 = vpop.permute.xlu1 %830 }
 0x172   : > { %1818 = vperm.xlu1 %3488, %v1684_v28   ;;  %2669 = vperm.xlu0 %3487, %v2547_v30   ;;  %v4463_v28 = vpop.permute.xlu0 %735  ;;  %v4465_v30 = vpop.permute.xlu1 %740 }
 0x173   : > { %5331 = vst [vmem:[#allocation14_spill] sm:$0xff] %v4463_v28  ;;  %5332 = vst [vmem:[#allocation15_spill] sm:$0xff] %v4465_v30 }
 0x176   : > { %1823 = vperm.xlu1 %3488, %v1685_v33   ;;  %2674 = vperm.xlu0 %3487, %v2548_v35   ;;  %v4467_v33 = vpop.permute.xlu0 %895  ;;  %v4469_v35 = vpop.permute.xlu1 %900 }
 0x177   : > { %5333 = vst [vmem:[#allocation16_spill] sm:$0xff] %v4467_v33  ;;  %5334 = vst [vmem:[#allocation17_spill] sm:$0xff] %v4469_v35 }
 0x17a   : > { %1828 = vperm.xlu1 %3488, %v1686_v36   ;;  %2679 = vperm.xlu0 %3487, %v2549_v40   ;;  %v816_v36 = vpop.permute.xlu0 %815  ;;  %v3523_v40 = vld [vmem:[%s5314_s5 + $0x4] ss:$16 sps:$4 sm:$0xff]  }
 0x17b   : > { %2203 = vmatprep.mubr.bf16.mxu1 %v3523_v40 }
 0x17e   : > { %1833 = vperm.xlu1 %3488, %v1687_v41   ;;  %2684 = vperm.xlu0 %3487, %v2550_v44   ;;  %v4474_v41 = vpop.permute.xlu1 %820  ;;  %v3526_v44 = vld [vmem:[%s5314_s5 + $0xc] ss:$16 sps:$4 sm:$0xff]  }
 0x17f   : > { %2364 = vmatprep.mubr.bf16.mxu0 %v3526_v44 }
 0x182   : > { %1838 = vperm.xlu1 %3488, %v1688_v45   ;;  %2689 = vperm.xlu0 %3487, %v2551_v48   ;;  %v4479_v45 = vpop.permute.xlu0 %725  ;;  %v4481_v48 = vpop.permute.xlu1 %730 }
 0x183   : > { %5335 = vst [vmem:[#allocation18_spill] sm:$0xff] %v4479_v45  ;;  %5336 = vst [vmem:[#allocation19_spill] sm:$0xff] %v4481_v48 }
 0x186   : > { %1843 = vperm.xlu1 %3488, %v1689_v49   ;;  %2694 = vperm.xlu0 %3487, %v2552_v54   ;;  %v4483_v49 = vpop.permute.xlu0 %885  ;;  %v4485_v54 = vpop.permute.xlu1 %890 }
 0x187   : > { %5337 = vst [vmem:[#allocation20_spill] sm:$0xff] %v4483_v49  ;;  %5338 = vst [vmem:[#allocation21_spill] sm:$0xff] %v4485_v54 }
 0x18a   : > { %1848 = vperm.xlu1 %3488, %v1690_v55   ;;  %2699 = vperm.xlu0 %3487, %v2553_v57   ;;  %v806_v55 = vpop.permute.xlu0 %805  ;;  %v811_v57 = vpop.permute.xlu1 %810 }
 0x18e   : > { %2704 = vperm.xlu1 %3488, %v2554_v59   ;;  %2709 = vperm.xlu0 %3487, %v2555_v1   ;;  %v4487_v59 = vpop.permute.xlu0 %715  ;;  %v4489_v1 = vpop.permute.xlu1 %720 }
 0x18f   : > { %5339 = vst [vmem:[#allocation22_spill] sm:$0xff] %v4487_v59  ;;  %5340 = vst [vmem:[#allocation23_spill] sm:$0xff] %v4489_v1 }
 0x192   : > { %2714 = vperm.xlu1 %3488, %v2556_v2   ;;  %2821 = vperm.xlu0 %3487, %v2818_v8   ;;  %v4491_v2 = vpop.permute.xlu0 %875  ;;  %v4493_v8 = vpop.permute.xlu1 %880 }
 0x193   : > { %5341 = vst [vmem:[#allocation24_spill] sm:$0xff] %v4491_v2  ;;  %5342 = vst [vmem:[#allocation25_spill] sm:$0xff] %v4493_v8 }
 0x196   : > { %v796_v49 = vpop.permute.xlu0 %795  ;;  %v801_v59 = vpop.permute.xlu1 %800 }
 0x1cb   : > { %v3353_v40 = vpop.f32.mrf.mxu0  ;;  %v3385_v44 = vpop.f32.mrf.mxu1 }
 0x1cc   : > { %v1253_v45 = vadd.f32 %v3353_v40, %v4147_v7  ;;  %v1381_v33 = vadd.f32 %v3385_v44, %v806_v55 }
 0x1cd   : > { %v1244_v48 = vpop.f32.mrf.mxu0  ;;  %v1372_v28 = vpop.f32.mrf.mxu1 }
 0x1ce   : > { %v1245_v54 = vadd.f32 %v1244_v48, %v4123_v63  ;;  %v1373_v35 = vadd.f32 %v1372_v28, %v796_v49  ;;  %v1501_v2 = vmax.f32 %v1253_v45, 0.0  ;;  %v1533_v9 = vmax.f32 %v1381_v33, 0.0 }
 0x1cf   : > { %v3354_v30 = vpop.f32.mrf.mxu0  ;;  %v3386_v19 = vpop.f32.mrf.mxu1 }
 0x1d0   : > { %v1256_v1 = vadd.f32 %v3354_v30, %v4157_v10  ;;  %v1384_v14 = vadd.f32 %v3386_v19, %v811_v57  ;;  %v1499_v40 = vmax.f32 %v1245_v54, 0.0  ;;  %v1531_v44 = vmax.f32 %v1373_v35, 0.0 }
 0x1d1   : > { %v1247_v8 = vpop.f32.mrf.mxu0  ;;  %v1375_v22 = vpop.f32.mrf.mxu1 }
 0x1d2   : > { %v1502_v17 = vmax.f32 %v1256_v1, 0.0  ;;  %v1534_v4 = vmax.f32 %v1384_v14, 0.0  ;;  %v1248_v7 = vadd.f32 %v1247_v8, %v4127_v0  ;;  %v1376_v55 = vadd.f32 %v1375_v22, %v801_v59 }
 0x1d3   : > { %v3357_v51 = vpop.f32.mrf.mxu0  ;;  %v3389_v63 = vpop.f32.mrf.mxu1 }
 0x1d4   : > { %v4499_v28 = vpack.c.bf16 %v1502_v17, %v1501_v2  ;;  %v4501_v48 = vpack.c.bf16 %v1534_v4, %v1533_v9  ;;  %v1500_v49 = vmax.f32 %v1248_v7, 0.0  ;;  %v1532_v10 = vmax.f32 %v1376_v55, 0.0 }
 0x1d5   : > { %v1269_v19 = vadd.f32 %v3357_v51, %v4193_v21  ;;  %v1397_v30 = vadd.f32 %v3389_v63, %v826_v23  ;;  %v1260_v33 = vpop.f32.mrf.mxu0  ;;  %v1388_v45 = vpop.f32.mrf.mxu1 }
 0x1d6   : > { %5343 = vst [vmem:[#allocation26_spill] sm:$0xff] %v4499_v28  ;;  %5344 = vst [vmem:[#allocation27_spill] sm:$0xff] %v4501_v48  ;;  %v4504_v57 = vpack.c.bf16 %v1500_v49, %v1499_v40  ;;  %v4506_v14 = vpack.c.bf16 %v1532_v10, %v1531_v44  ;;  %v1261_v0 = vadd.f32 %v1260_v33, %v4173_v15 }
 0x1d7   : > { %v1389_v22 = vadd.f32 %v1388_v45, %v816_v36  ;;  %v3358_v35 = vpop.f32.mrf.mxu0  ;;  %v3390_v54 = vpop.f32.mrf.mxu1  ;;  %v1505_v9 = vmax.f32 %v1269_v19, 0.0  ;;  %v1537_v59 = vmax.f32 %v1397_v30, 0.0 }
 0x1d8   : > { %5345 = vst [vmem:[#allocation28_spill] sm:$0xff] %v4504_v57  ;;  %5346 = vst [vmem:[#allocation29_spill] sm:$0xff] %v4506_v14  ;;  %v1272_v17 = vadd.f32 %v3358_v35, %v4207_v26  ;;  %v1400_v4 = vadd.f32 %v3390_v54, %v831_v27  ;;  %v1503_v7 = vmax.f32 %v1261_v0, 0.0 }
 0x1d9   : > { %v1263_v1 = vpop.f32.mrf.mxu0  ;;  %v1391_v2 = vpop.f32.mrf.mxu1  ;;  %v1535_v55 = vmax.f32 %v1389_v22, 0.0 }
 0x1da   : > { %v1506_v21 = vmax.f32 %v1272_v17, 0.0  ;;  %v1538_v51 = vmax.f32 %v1400_v4, 0.0  ;;  %v1264_v23 = vadd.f32 %v1263_v1, %v4181_v18  ;;  %v1392_v8 = vadd.f32 %v1391_v2, %v4474_v41 }
 0x1db   : > { %v3361_v40 = vpop.f32.mrf.mxu0  ;;  %v3393_v15 = vpop.f32.mrf.mxu1 }
 0x1dc   : > { %v4512_v36 = vpack.c.bf16 %v1506_v21, %v1505_v9  ;;  %v4514_v44 = vpack.c.bf16 %v1538_v51, %v1537_v59  ;;  %v1504_v26 = vmax.f32 %v1264_v23, 0.0  ;;  %v1536_v27 = vmax.f32 %v1392_v8, 0.0 }
 0x1dd   : > { %v1276_v63 = vpop.f32.mrf.mxu0  ;;  %v4516_v49 = vpop.f32.mrf.mxu1 }
 0x1de   : > { %5347 = vst [vmem:[#allocation30_spill] sm:$0xff] %v4512_v36  ;;  %5348 = vst [vmem:[#allocation31_spill] sm:$0xff] %v4514_v44  ;;  %v4518_v10 = vpack.c.bf16 %v1504_v26, %v1503_v7  ;;  %v4520_v19 = vpack.c.bf16 %v1536_v27, %v1535_v55 }
 0x1df   : > { %v3362_v18 = vpop.f32.mrf.mxu0  ;;  %v3394_v30 = vpop.f32.mrf.mxu1 }
 0x1e0   : > { %5349 = vst [vmem:[#allocation32_spill] sm:$0xff] %v4518_v10  ;;  %5350 = vst [vmem:[#allocation33_spill] sm:$0xff] %v4520_v19 }
 0x1e1   : > { %v4522_v41 = vpop.f32.mrf.mxu0  ;;  %v4524_v33 = vpop.f32.mrf.mxu1 }
 0x1e3   : > { %v3365_v45 = vpop.f32.mrf.mxu0  ;;  %v3397_v0 = vpop.f32.mrf.mxu1 }
 0x1e5   : > { %v1292_v22 = vpop.f32.mrf.mxu0  ;;  %v1420_v35 = vpop.f32.mrf.mxu1 }
 0x1e7   : > { %v3366_v54 = vpop.f32.mrf.mxu0  ;;  %v3398_v17 = vpop.f32.mrf.mxu1 }
 0x1e9   : > { %v1295_v4 = vpop.f32.mrf.mxu0  ;;  %v1423_v9 = vpop.f32.mrf.mxu1 }
 0x1eb   : > { %v4526_v59 = vpop.f32.mrf.mxu0  ;;  %v4528_v1 = vpop.f32.mrf.mxu1 }
 0x1ec   : > { %5351 = vst [vmem:[#allocation34_spill] sm:$0xff] %v4526_v59  ;;  %5352 = vst [vmem:[#allocation35_spill] sm:$0xff] %v4528_v1  ;;  %v4566_v1 = vadd.f32 %v3393_v15, %v4405_v43  ;;  %v1304_v59 = vadd.f32 %v3366_v54, %v4257_v42 }
 0x1ed   : > { %v4530_v2 = vpop.f32.mrf.mxu0  ;;  %v4532_v21 = vpop.f32.mrf.mxu1 }
 0x1ee   : > { %5353 = vst [vmem:[#allocation36_spill] sm:$0xff] %v4530_v2  ;;  %5354 = vst [vmem:[#allocation37_spill] sm:$0xff] %v4532_v21 }
 0x1ef   : > { %v4534_v51 = vpop.f32.mrf.mxu0  ;;  %v4536_v23 = vpop.f32.mrf.mxu1 }
 0x1f0   : > { %5355 = vst [vmem:[#allocation38_spill] sm:$0xff] %v4534_v51  ;;  %5356 = vst [vmem:[#allocation39_spill] sm:$0xff] %v4536_v23  ;;  %v1432_v23 = vadd.f32 %v3398_v17, %v4307_v58  ;;  %v4571_v51 = vadd.f32 %v3362_v18, %v4387_v34  ;;  %v1514_v34 = vmax.f32 %v1304_v59, 0.0  ;;  %v1421_v17 = vadd.f32 %v1420_v35, %v4353_v16 }
 0x1f1   : > { %v4538_v8 = vpop.f32.mrf.mxu0  ;;  %v4540_v7 = vpop.f32.mrf.mxu1  ;;  %v1296_v58 = vadd.f32 %v1295_v4, %v4335_v6  ;;  %v1424_v59 = vadd.f32 %v1423_v9, %v4361_v20 }
 0x1f2   : > { %5357 = vst [vmem:[#allocation40_spill] sm:$0xff] %v4538_v8  ;;  %5358 = vst [vmem:[#allocation41_spill] sm:$0xff] %v4540_v7  ;;  %v4563_v8 = vadd.f32 %v3361_v40, %v4379_v29  ;;  %v1429_v29 = vadd.f32 %v3397_v0, %v4293_v53  ;;  %v4579_v40 = vadd.f32 %v1276_v63, %v4431_v56  ;;  %v1546_v18 = vmax.f32 %v1432_v23, 0.0 }
 0x1f3   : > { %v4542_v55 = vpop.f32.mrf.mxu0  ;;  %v4544_v26 = vpop.f32.mrf.mxu1  ;;  %v1293_v0 = vadd.f32 %v1292_v22, %v4327_v3 }
 0x1f4   : > { %v1509_v42 = vmax.f32 %v4563_v8, 0.0  ;;  %v1545_v63 = vmax.f32 %v1429_v29, 0.0 }
 0x1f5   : > { %v4546_v27 = vpop.f32.mrf.mxu0  ;;  %v4548_v14 = vpop.f32.mrf.mxu1 }
 0x1f6   : > { %5359 = vst [vmem:[#allocation42_spill] sm:$0xff] %v4546_v27  ;;  %5360 = vst [vmem:[#allocation43_spill] sm:$0xff] %v4548_v14  ;;  %v4574_v14 = vadd.f32 %v3394_v30, %v4413_v46 }
 0x1f7   : > { %v4550_v57 = vpop.f32.mrf.mxu0  ;;  %v4552_v48 = vpop.f32.mrf.mxu1 }
 0x1f9   : > { %v4554_v28 = vpop.f32.mrf.mxu0  ;;  %v4556_v19 = vpop.f32.mrf.mxu1 }
 0x1fa   : > { %5361 = vst [vmem:[#allocation44_spill] sm:$0xff] %v4554_v28  ;;  %5362 = vst [vmem:[#allocation45_spill] sm:$0xff] %v4556_v19  ;;  %v1301_v28 = vadd.f32 %v3365_v45, %v4247_v39 }
 0x1fb   : > { %v3377_v10 = vpop.f32.mrf.mxu0  ;;  %v3409_v21 = vpop.f32.mrf.mxu1 }
 0x1fc   : > { %v1513_v56 = vmax.f32 %v1301_v28, 0.0  ;;  %v1349_v29 = vadd.f32 %v3377_v10, %v4369_v24  ;;  %v1280_v24 = vadd.f32 %v4522_v41, %v4439_v60  ;;  %v1511_v10 = vmax.f32 %v1293_v0, 0.0  ;;  %v5365_v60 = vld [vmem:[#allocation11_spill] sm:$0xff] }
 0x1fd   : > { %v4558_v2 = vpop.f32.mrf.mxu0  ;;  %v4560_v44 = vpop.f32.mrf.mxu1  ;;  %v1336_v41 = vadd.f32 %v4550_v57, %v5365_v60 }
 0x1fe   : > { %v1508_v8 = vmax.f32 %v1280_v24, 0.0 }
 0x1ff   : > { %v3378_v36 = vpop.f32.mrf.mxu0  ;;  %v3410_v7 = vpop.f32.mrf.mxu1 }
 0x200   : > { %v1352_v3 = vadd.f32 %v3378_v36, %v4371_v25  ;;  %v1480_v16 = vadd.f32 %v3410_v7, %v4397_v38  ;;  %v1512_v7 = vmax.f32 %v1296_v58, 0.0  ;;  %v1525_v58 = vmax.f32 %v1349_v29, 0.0 }
 0x201   : > { %v1343_v27 = vpop.f32.mrf.mxu0  ;;  %v1471_v19 = vpop.f32.mrf.mxu1 }
 0x203   : > { %v3381_v43 = vpop.f32.mrf.mxu0  ;;  %v3413_v15 = vpop.f32.mrf.mxu1 }
 0x204   : > { %v1365_v54 = vadd.f32 %v3381_v43, %v4223_v31  ;;  %v1493_v39 = vadd.f32 %v3413_v15, %v4273_v47  ;;  %v1570_v43 = vpack.c.bf16 %v1514_v34, %v1513_v56  ;;  %v1586_v47 = vpack.c.bf16 %v1546_v18, %v1545_v63 }
 0x205   : > { %v1356_v53 = vpop.f32.mrf.mxu0  ;;  %v1484_v45 = vpop.f32.mrf.mxu1  ;;  %v1569_v56 = vpack.c.bf16 %v1512_v7, %v1511_v10 }
 0x206   : > { %v1357_v23 = vadd.f32 %v1356_v53, %v4317_v61  ;;  %v1485_v30 = vadd.f32 %v1484_v45, %v4343_v11  ;;  %v1529_v22 = vmax.f32 %v1365_v54, 0.0  ;;  %v1561_v6 = vmax.f32 %v1493_v39, 0.0 }
 0x207   : > { %v3382_v46 = vpop.f32.mrf.mxu0  ;;  %v3414_v31 = vpop.f32.mrf.mxu1  ;;  %v1526_v54 = vmax.f32 %v1352_v3, 0.0  ;;  %v1344_v39 = vadd.f32 %v1343_v27, %v4423_v52  ;;  %v1558_v53 = vmax.f32 %v1480_v16, 0.0  ;;  %v5363_v52 = vld [vmem:[#allocation7_spill] sm:$0xff]  ;;  %v5372_v3 = vld [vmem:[#allocation12_spill] sm:$0xff] }
 0x208   : > { %v1368_v15 = vadd.f32 %v3382_v46, %v4227_v32  ;;  %v1496_v28 = vadd.f32 %v3414_v31, %v4281_v50  ;;  %v1477_v32 = vadd.f32 %v3409_v21, %v4395_v37  ;;  %v1527_v34 = vmax.f32 %v1357_v23, 0.0  ;;  %v5367_v31 = vld [vmem:[#allocation9_spill] sm:$0xff] }
 0x209   : > { %v1359_v35 = vpop.f32.mrf.mxu0  ;;  %v1487_v20 = vpop.f32.mrf.mxu1  ;;  %v1559_v50 = vmax.f32 %v1485_v30, 0.0  ;;  %v1544_v46 = vmax.f32 %v1424_v59, 0.0  ;;  %v1408_v37 = vadd.f32 %v4524_v33, %v4453_v13  ;;  %v1543_v21 = vmax.f32 %v1421_v17, 0.0  ;;  %v5366_v13 = vld [vmem:[#allocation13_spill] sm:$0xff] }
 0x20a   : > { %v1530_v4 = vmax.f32 %v1368_v15, 0.0  ;;  %v1562_v61 = vmax.f32 %v1496_v28, 0.0  ;;  %v1360_v11 = vadd.f32 %v1359_v35, %v4319_v62  ;;  %v1488_v9 = vadd.f32 %v1487_v20, %v4345_v12  ;;  %v5374_v35 = vld [vmem:[#allocation44_spill] sm:$0xff]  ;;  %v5375_v20 = vld [vmem:[#allocation17_spill] sm:$0xff] }
 0x20b   : > { %v1472_v62 = vadd.f32 %v1471_v19, %v4449_v5  ;;  %v1557_v30 = vmax.f32 %v1477_v32, 0.0  ;;  %v1341_v27 = vadd.f32 %v4558_v2, %v5363_v52  ;;  %v5364_v5 = vld [vmem:[#allocation8_spill] sm:$0xff]  ;;  %v1585_v63 = vpack.c.bf16 %v1544_v46, %v1543_v21  ;;  %v5385_v21 = vld [vmem:[#allocation18_spill] sm:$0xff] }
 0x20c   : > { %v1578_v18 = vpack.c.bf16 %v1530_v4, %v1529_v22  ;;  %v1594_v25 = vpack.c.bf16 %v1562_v61, %v1561_v6  ;;  %v1528_v36 = vmax.f32 %v1360_v11, 0.0  ;;  %v1560_v38 = vmax.f32 %v1488_v9, 0.0  ;;  %v5376_v4 = vld [vmem:[#allocation45_spill] sm:$0xff]  ;;  %v5387_v52 = vld [vmem:[#allocation20_spill] sm:$0xff] }
 0x20d   : > { %v1469_v19 = vadd.f32 %v4560_v44, %v5364_v5  ;;  %v1464_v33 = vadd.f32 %v4552_v48, %v5366_v13  ;;  %v1576_v0 = vpack.c.bf16 %v1526_v54, %v1525_v58  ;;  %v1592_v17 = vpack.c.bf16 %v1558_v53, %v1557_v30  ;;  %v5371_v48 = vld [vmem:[#allocation10_spill] sm:$0xff]  ;;  %v5381_v54 = vld [vmem:[#allocation19_spill] sm:$0xff]  ;;  %v5390_v13 = vld [vmem:[#allocation40_spill] sm:$0xff] }
 0x20e   : > { %v1577_v45 = vpack.c.bf16 %v1528_v36, %v1527_v34  ;;  %v1593_v12 = vpack.c.bf16 %v1560_v38, %v1559_v50  ;;  %3117 = vmatprep.subr.bf16.mxu1 %v1578_v18  ;;  %3229 = vmatprep.subr.bf16.mxu0 %v1594_v25  ;;  %v1524_v59 = vmax.f32 %v1344_v39, 0.0  ;;  %v1556_v23 = vmax.f32 %v1472_v62, 0.0  ;;  %v5377_v34 = vld [vmem:[#allocation14_spill] sm:$0xff]  ;;  %v5379_v25 = vld [vmem:[#allocation16_spill] sm:$0xff]  ;;  %v5380_v36 = vld [vmem:[#allocation43_spill] sm:$0xff] }
 0x20f   : > { %3118 = vmatpush3.bf16.msra.mxu1 %v1570_v43  ;;  %3230 = vmatpush3.bf16.msra.mxu0 %v1586_v47  ;;  %v1405_v2 = vadd.f32 %v4516_v49, %v5367_v31  ;;  %v5368_v44 = vmax.f32 %v4571_v51, 0.0  ;;  %v5369_v47 = vmax.f32 %v4566_v1, 0.0  ;;  %v5370_v15 = vmax.f32 %v4574_v14, 0.0  ;;  %v5373_v1 = vld [vmem:[#allocation15_spill] sm:$0xff]  ;;  %v5378_v50 = vld [vmem:[#allocation42_spill] sm:$0xff]  ;;  %v5383_v62 = vld [vmem:[#allocation21_spill] sm:$0xff] }
 0x210   : > { %3119 = vmatprep.subr.bf16.mxu1 %v1577_v45  ;;  %3231 = vmatprep.subr.bf16.mxu0 %v1593_v12  ;;  %v1333_v28 = vadd.f32 %v4542_v55, %v5371_v48  ;;  %v1461_v16 = vadd.f32 %v4544_v26, %v5372_v3  ;;  %v1523_v22 = vmax.f32 %v1341_v27, 0.0  ;;  %v1555_v49 = vmax.f32 %v1469_v19, 0.0  ;;  %v5382_v39 = vld [vmem:[#allocation38_spill] sm:$0xff]  ;;  %v5388_v27 = vld [vmem:[#allocation35_spill] sm:$0xff]  ;;  %v5398_v3 = vld [vmem:[#allocation37_spill] sm:$0xff] }
 0x211   : > { %v1568_v43 = vpack.c.bf16 %v5368_v44, %v1509_v42  ;;  %v1584_v57 = vpack.c.bf16 %v5370_v15, %v5369_v47  ;;  %v1540_v51 = vmax.f32 %v1408_v37, 0.0  ;;  %v1522_v42 = vmax.f32 %v1336_v41, 0.0  ;;  %v5386_v58 = vld [vmem:[#allocation34_spill] sm:$0xff]  ;;  %v5389_v41 = vld [vmem:[#allocation23_spill] sm:$0xff] }
 0x212   : > { %v1554_v6 = vmax.f32 %v1464_v33, 0.0  ;;  %v1328_v14 = vadd.f32 %v5374_v35, %v5373_v1  ;;  %v1456_v61 = vadd.f32 %v5376_v4, %v5375_v20  ;;  %v1575_v11 = vpack.c.bf16 %v1524_v59, %v1523_v22  ;;  %v5394_v44 = vld [vmem:[#allocation31_spill] sm:$0xff]  ;;  %v5395_v15 = vld [vmem:[#allocation22_spill] sm:$0xff] }
 0x213   : > { %3120 = vmatpush3.bf16.msra.mxu1 %v1569_v56  ;;  %3232 = vmatpush3.bf16.msra.mxu0 %v1585_v63  ;;  %v1591_v9 = vpack.c.bf16 %v1556_v23, %v1555_v49  ;;  %v1507_v55 = vmax.f32 %v4579_v40, 0.0  ;;  %v1539_v29 = vmax.f32 %v1405_v2, 0.0  ;;  %v1521_v26 = vmax.f32 %v1333_v28, 0.0  ;;  %v5384_v40 = vld [vmem:[#allocation39_spill] sm:$0xff]  ;;  %v5393_v2 = vld [vmem:[#allocation30_spill] sm:$0xff]  ;;  %v5397_v28 = vld [vmem:[#allocation24_spill] sm:$0xff] }
 0x214   : > { %3121 = vmatprep.subr.bf16.mxu1 %v1576_v0  ;;  %3233 = vmatprep.subr.bf16.mxu0 %v1592_v17  ;;  %v1553_v32 = vmax.f32 %v1461_v16, 0.0  ;;  %v1325_v18 = vadd.f32 %v5378_v50, %v5377_v34  ;;  %v1453_v38 = vadd.f32 %v5380_v36, %v5379_v25  ;;  %v1320_v53 = vadd.f32 %v5382_v39, %v5381_v54  ;;  %v5391_v0 = vld [vmem:[#allocation25_spill] sm:$0xff]  ;;  %v5401_v4 = vld [vmem:[#allocation26_spill] sm:$0xff] }
 0x215   : > { %v1567_v7 = vpack.c.bf16 %v1508_v8, %v1507_v55  ;;  %v1583_v46 = vpack.c.bf16 %v1540_v51, %v1539_v29  ;;  %v1448_v45 = vadd.f32 %v5384_v40, %v5383_v62  ;;  %v1574_v12 = vpack.c.bf16 %v1522_v42, %v1521_v26  ;;  %v5392_v17 = vld [vmem:[#allocation41_spill] sm:$0xff]  ;;  %v5399_v42 = vld [vmem:[#allocation32_spill] sm:$0xff] }
 0x216   : > { %v1590_v24 = vpack.c.bf16 %v1554_v6, %v1553_v32  ;;  %v1520_v37 = vmax.f32 %v1328_v14, 0.0  ;;  %v1552_v10 = vmax.f32 %v1456_v61, 0.0  ;;  %v1317_v30 = vadd.f32 %v5386_v58, %v5385_v21  ;;  %v5400_v6 = vld [vmem:[#allocation33_spill] sm:$0xff]  ;;  %v5402_v61 = vld [vmem:[#allocation27_spill] sm:$0xff]  ;;  %v5403_v55 = vld [vmem:[#allocation28_spill] sm:$0xff] }
 0x217   : > { %3122 = vmatpush3.bf16.msra.mxu1 %v1568_v43  ;;  %3234 = vmatpush3.bf16.msra.mxu0 %v1584_v57  ;;  %v1445_v5 = vadd.f32 %v5388_v27, %v5387_v52  ;;  %v1519_v19 = vmax.f32 %v1325_v18, 0.0  ;;  %v1551_v56 = vmax.f32 %v1453_v38, 0.0  ;;  %v1518_v63 = vmax.f32 %v1320_v53, 0.0  ;;  %v5396_v57 = vld [vmem:[#allocation36_spill] sm:$0xff]  ;;  %v5404_v29 = vld [vmem:[#allocation29_spill] sm:$0xff] }
 0x218   : > { %3123 = vmatprep.subr.bf16.mxu1 %v1575_v11  ;;  %3235 = vmatprep.subr.bf16.mxu0 %v1591_v9  ;;  %v1550_v60 = vmax.f32 %v1448_v45, 0.0  ;;  %v1312_v33 = vadd.f32 %v5390_v13, %v5389_v41  ;;  %v1440_v59 = vadd.f32 %v5392_v17, %v5391_v0  ;;  %v1517_v43 = vmax.f32 %v1317_v30, 0.0  ;;  %v3521_v11 = vld [vmem:[%s5314_s5] ss:$16 sps:$4 sm:$0xff]   ;;  %v3524_v9 = vld [vmem:[%s5314_s5 + $0x8] ss:$16 sps:$4 sm:$0xff]  }
 0x219   : > { %v1573_v23 = vpack.c.bf16 %v1520_v37, %v1519_v19  ;;  %v1589_v31 = vpack.c.bf16 %v1552_v10, %v1551_v56  ;;  %v1549_v47 = vmax.f32 %v1445_v5, 0.0  ;;  %v1309_v48 = vadd.f32 %v5396_v57, %v5395_v15  ;;  %v3527_v26 = vld [vmem:[%s5314_s5 + $0x24] ss:$16 sps:$4 sm:$0xff]   ;;  %v3530_v32 = vld [vmem:[%s5314_s5 + $0x2c] ss:$16 sps:$4 sm:$0xff]  }
 0x21a   : > { %v1437_v16 = vadd.f32 %v5398_v3, %v5397_v28  ;;  %v1572_v22 = vpack.c.bf16 %v1518_v63, %v1517_v43  ;;  %v1516_v8 = vmax.f32 %v1312_v33, 0.0  ;;  %v1548_v51 = vmax.f32 %v1440_v59, 0.0  ;;  %v3529_v34 = vld [vmem:[%s5314_s5 + $0x20] ss:$16 sps:$4 sm:$0xff]   ;;  %v3532_v50 = vld [vmem:[%s5314_s5 + $0x28] ss:$16 sps:$4 sm:$0xff]  }
 0x21b   : > { %3124 = vmatpush3.bf16.msra.mxu1 %v1567_v7  ;;  %3236 = vmatpush3.bf16.msra.mxu0 %v1583_v46  ;;  %v1588_v49 = vpack.c.bf16 %v1550_v60, %v1549_v47  ;;  %v1515_v1 = vmax.f32 %v1309_v48, 0.0  ;;  %v3533_v18 = vld [vmem:[%s5314_s5 + $0x44] ss:$16 sps:$4 sm:$0xff]   ;;  %v3536_v25 = vld [vmem:[%s5314_s5 + $0x4c] ss:$16 sps:$4 sm:$0xff]  }
 0x21c   : > { %3125 = vmatprep.subr.bf16.mxu1 %v1574_v12  ;;  %3237 = vmatprep.subr.bf16.mxu0 %v1590_v24  ;;  %v1547_v35 = vmax.f32 %v1437_v16, 0.0  ;;  %v3535_v36 = vld [vmem:[%s5314_s5 + $0x40] ss:$16 sps:$4 sm:$0xff]   ;;  %v3538_v38 = vld [vmem:[%s5314_s5 + $0x48] ss:$16 sps:$4 sm:$0xff]  }
 0x21d   : > { %v1571_v14 = vpack.c.bf16 %v1516_v8, %v1515_v1  ;;  %v3539_v7 = vld [vmem:[%s5314_s5 + $0x64] ss:$16 sps:$4 sm:$0xff]   ;;  %v3542_v46 = vld [vmem:[%s5314_s5 + $0x6c] ss:$16 sps:$4 sm:$0xff]   ;;  %v3541_v54 = vld [vmem:[%s5314_s5 + $0x60] ss:$16 sps:$4 sm:$0xff]  }
 0x21e   : > { %v1587_v20 = vpack.c.bf16 %v1548_v51, %v1547_v35  ;;  %v3544_v39 = vld [vmem:[%s5314_s5 + $0x68] ss:$16 sps:$4 sm:$0xff]   ;;  %v3545_v53 = vld [vmem:[%s5314_s5 + $0x84] ss:$16 sps:$4 sm:$0xff]   ;;  %v3548_v62 = vld [vmem:[%s5314_s5 + $0x8c] ss:$16 sps:$4 sm:$0xff]  }
 0x21f   : > { %3126 = vmatpush3.bf16.msra.mxu1 %v5393_v2  ;;  %3238 = vmatpush3.bf16.msra.mxu0 %v5394_v44  ;;  %v3547_v40 = vld [vmem:[%s5314_s5 + $0x80] ss:$16 sps:$4 sm:$0xff]   ;;  %v3550_v45 = vld [vmem:[%s5314_s5 + $0x88] ss:$16 sps:$4 sm:$0xff]   ;;  %v3551_v12 = vld [vmem:[%s5314_s5 + $0xa4] ss:$16 sps:$4 sm:$0xff]  }
 0x220   : > { %3127 = vmatprep.subr.bf16.mxu1 %v1573_v23  ;;  %3239 = vmatprep.subr.bf16.mxu0 %v1589_v31  ;;  %v3554_v24 = vld [vmem:[%s5314_s5 + $0xac] ss:$16 sps:$4 sm:$0xff]   ;;  %v3553_v37 = vld [vmem:[%s5314_s5 + $0xa0] ss:$16 sps:$4 sm:$0xff]   ;;  %v3556_v10 = vld [vmem:[%s5314_s5 + $0xa8] ss:$16 sps:$4 sm:$0xff]  }
 0x221   : > { %v3557_v21 = vld [vmem:[%s5314_s5 + $0xc4] ss:$16 sps:$4 sm:$0xff]   ;;  %v3560_v58 = vld [vmem:[%s5314_s5 + $0xcc] ss:$16 sps:$4 sm:$0xff]   ;;  %v3559_v30 = vld [vmem:[%s5314_s5 + $0xc0] ss:$16 sps:$4 sm:$0xff]  }
 0x222   : > { %v3562_v52 = vld [vmem:[%s5314_s5 + $0xc8] ss:$16 sps:$4 sm:$0xff]   ;;  %v3563_v27 = vld [vmem:[%s5314_s5 + $0xe4] ss:$16 sps:$4 sm:$0xff]   ;;  %v3566_v5 = vld [vmem:[%s5314_s5 + $0xec] ss:$16 sps:$4 sm:$0xff]  }
 0x223   : > { %3128 = vmatpush3.bf16.msra.mxu1 %v5399_v42  ;;  %3240 = vmatpush3.bf16.msra.mxu0 %v5400_v6  ;;  %v3565_v19 = vld [vmem:[%s5314_s5 + $0xe0] ss:$16 sps:$4 sm:$0xff]   ;;  %v3568_v56 = vld [vmem:[%s5314_s5 + $0xe8] ss:$16 sps:$4 sm:$0xff]   ;;  %v3569_v63 = vld [vmem:[%s5314_s5 + $0x104] ss:$16 sps:$4 sm:$0xff]  }
 0x224   : > { %3129 = vmatprep.subr.bf16.mxu1 %v1572_v22  ;;  %3241 = vmatprep.subr.bf16.mxu0 %v1588_v49  ;;  %v3572_v60 = vld [vmem:[%s5314_s5 + $0x10c] ss:$16 sps:$4 sm:$0xff]   ;;  %v3571_v41 = vld [vmem:[%s5314_s5 + $0x100] ss:$16 sps:$4 sm:$0xff]   ;;  %v3574_v13 = vld [vmem:[%s5314_s5 + $0x108] ss:$16 sps:$4 sm:$0xff]  }
 0x225   : > { %v3575_v33 = vld [vmem:[%s5314_s5 + $0x124] ss:$16 sps:$4 sm:$0xff]   ;;  %v3578_v0 = vld [vmem:[%s5314_s5 + $0x12c] ss:$16 sps:$4 sm:$0xff]   ;;  %v3577_v17 = vld [vmem:[%s5314_s5 + $0x120] ss:$16 sps:$4 sm:$0xff]  }
 0x226   : > { %v3580_v59 = vld [vmem:[%s5314_s5 + $0x128] ss:$16 sps:$4 sm:$0xff]   ;;  %v3581_v23 = vld [vmem:[%s5314_s5 + $0x144] ss:$16 sps:$4 sm:$0xff]   ;;  %v3584_v31 = vld [vmem:[%s5314_s5 + $0x14c] ss:$16 sps:$4 sm:$0xff]  }
 0x227   : > { %3130 = vmatpush3.bf16.msra.mxu1 %v5401_v4  ;;  %3242 = vmatpush3.bf16.msra.mxu0 %v5402_v61  ;;  %v3583_v2 = vld [vmem:[%s5314_s5 + $0x140] ss:$16 sps:$4 sm:$0xff]   ;;  %v3586_v44 = vld [vmem:[%s5314_s5 + $0x148] ss:$16 sps:$4 sm:$0xff]   ;;  %v3587_v43 = vld [vmem:[%s5314_s5 + $0x164] ss:$16 sps:$4 sm:$0xff]  }
 0x228   : > { %3131 = vmatprep.subr.bf16.mxu1 %v1571_v14  ;;  %3243 = vmatprep.subr.bf16.mxu0 %v1587_v20  ;;  %v3590_v47 = vld [vmem:[%s5314_s5 + $0x16c] ss:$16 sps:$4 sm:$0xff]   ;;  %v3589_v15 = vld [vmem:[%s5314_s5 + $0x160] ss:$16 sps:$4 sm:$0xff]   ;;  %v3592_v57 = vld [vmem:[%s5314_s5 + $0x168] ss:$16 sps:$4 sm:$0xff]  }
 0x229   : > { %v3593_v48 = vld [vmem:[%s5314_s5 + $0x184] ss:$16 sps:$4 sm:$0xff]   ;;  %v3596_v28 = vld [vmem:[%s5314_s5 + $0x18c] ss:$16 sps:$4 sm:$0xff]   ;;  %v3595_v3 = vld [vmem:[%s5314_s5 + $0x180] ss:$16 sps:$4 sm:$0xff]  }
 0x22a   : > { %v3598_v16 = vld [vmem:[%s5314_s5 + $0x188] ss:$16 sps:$4 sm:$0xff]   ;;  %v3599_v22 = vld [vmem:[%s5314_s5 + $0x1a4] ss:$16 sps:$4 sm:$0xff]   ;;  %v3602_v49 = vld [vmem:[%s5314_s5 + $0x1ac] ss:$16 sps:$4 sm:$0xff]  }
 0x22b   : > { %3132 = vmatpush3.bf16.msra.mxu1 %v5403_v55  ;;  %3244 = vmatpush3.bf16.msra.mxu0 %v5404_v29  ;;  %v3601_v8 = vld [vmem:[%s5314_s5 + $0x1a0] ss:$16 sps:$4 sm:$0xff]   ;;  %v3604_v51 = vld [vmem:[%s5314_s5 + $0x1a8] ss:$16 sps:$4 sm:$0xff]   ;;  %v3605_v42 = vld [vmem:[%s5314_s5 + $0x1c4] ss:$16 sps:$4 sm:$0xff]  }
 0x22c   : > { %v3608_v6 = vld [vmem:[%s5314_s5 + $0x1cc] ss:$16 sps:$4 sm:$0xff]   ;;  %v3607_v1 = vld [vmem:[%s5314_s5 + $0x1c0] ss:$16 sps:$4 sm:$0xff]   ;;  %v3610_v35 = vld [vmem:[%s5314_s5 + $0x1c8] ss:$16 sps:$4 sm:$0xff]  }
 0x22d   : > { %v3611_v14 = vld [vmem:[%s5314_s5 + $0x1e4] ss:$16 sps:$4 sm:$0xff]   ;;  %v3614_v20 = vld [vmem:[%s5314_s5 + $0x1ec] ss:$16 sps:$4 sm:$0xff]   ;;  %v3613_v4 = vld [vmem:[%s5314_s5 + $0x1e0] ss:$16 sps:$4 sm:$0xff]  }
 0x22e   : > { %2204 = vmatmul.mubr.bf16.vlgmr.msra.gmra.mxu1 %v3521_v11  ;;  %2365 = vmatmul.mubr.bf16.vlgmr.msra.gmra.mxu0 %v3524_v9  ;;  %v3616_v61 = vld [vmem:[%s5314_s5 + $0x1e8] ss:$16 sps:$4 sm:$0xff]   ;;  %v1694_v11 = vpop.permute.xlu0 %1693  ;;  %v4848_v9 = vpop.permute.xlu1 %1698 }
 0x22f   : > { %2211 = vmatprep.mubr.bf16.mxu1 %v3527_v26  ;;  %2372 = vmatprep.mubr.bf16.mxu0 %v3530_v32 }
 0x232   : > { %v4850_v55 = vpop.permute.xlu0 %1703  ;;  %v4852_v29 = vpop.permute.xlu1 %1708 }
 0x236   : > { %2212 = vmatmul.mubr.bf16.gmra.mxu1 %v3529_v34  ;;  %2373 = vmatmul.mubr.bf16.gmra.mxu0 %v3532_v50  ;;  %v4854_v26 = vpop.permute.xlu0 %1713  ;;  %v4856_v32 = vpop.permute.xlu1 %1718 }
 0x237   : > { %2219 = vmatprep.mubr.bf16.mxu1 %v3533_v18  ;;  %2380 = vmatprep.mubr.bf16.mxu0 %v3536_v25 }
 0x23a   : > { %v4858_v34 = vpop.permute.xlu0 %1723  ;;  %v4860_v50 = vpop.permute.xlu1 %1728 }
 0x23e   : > { %2220 = vmatmul.mubr.bf16.gmra.mxu1 %v3535_v36  ;;  %2381 = vmatmul.mubr.bf16.gmra.mxu0 %v3538_v38  ;;  %v4862_v18 = vpop.permute.xlu0 %1733  ;;  %v4864_v25 = vpop.permute.xlu1 %1738 }
 0x23f   : > { %2227 = vmatprep.mubr.bf16.mxu1 %v3539_v7  ;;  %2388 = vmatprep.mubr.bf16.mxu0 %v3542_v46 }
 0x242   : > { %v4866_v36 = vpop.permute.xlu0 %1743  ;;  %v4868_v38 = vpop.permute.xlu1 %1748 }
 0x243   : > { %5405 = vst [vmem:[#allocation7_spill] sm:$0xff] %v4866_v36  ;;  %5406 = vst [vmem:[#allocation8_spill] sm:$0xff] %v4868_v38 }
 0x246   : > { %2228 = vmatmul.mubr.bf16.gmra.mxu1 %v3541_v54  ;;  %2389 = vmatmul.mubr.bf16.gmra.mxu0 %v3544_v39  ;;  %v4870_v7 = vpop.permute.xlu0 %1753  ;;  %v4872_v46 = vpop.permute.xlu1 %1758 }
 0x247   : > { %2235 = vmatprep.mubr.bf16.mxu1 %v3545_v53  ;;  %2396 = vmatprep.mubr.bf16.mxu0 %v3548_v62  ;;  %5407 = vst [vmem:[#allocation11_spill] sm:$0xff] %v4870_v7  ;;  %5408 = vst [vmem:[#allocation13_spill] sm:$0xff] %v4872_v46 }
 0x24a   : > { %v4874_v54 = vpop.permute.xlu0 %1763  ;;  %v4876_v39 = vpop.permute.xlu1 %1768 }
 0x24b   : > { %5409 = vst [vmem:[#allocation9_spill] sm:$0xff] %v4874_v54  ;;  %5410 = vst [vmem:[#allocation10_spill] sm:$0xff] %v4876_v39 }
 0x24e   : > { %2236 = vmatmul.mubr.bf16.gmra.mxu1 %v3547_v40  ;;  %2397 = vmatmul.mubr.bf16.gmra.mxu0 %v3550_v45  ;;  %v4878_v53 = vpop.permute.xlu0 %1773  ;;  %v4880_v62 = vpop.permute.xlu1 %1778 }
 0x24f   : > { %2243 = vmatprep.mubr.bf16.mxu1 %v3551_v12  ;;  %2404 = vmatprep.mubr.bf16.mxu0 %v3554_v24  ;;  %5411 = vst [vmem:[#allocation12_spill] sm:$0xff] %v4878_v53  ;;  %5412 = vst [vmem:[#allocation15_spill] sm:$0xff] %v4880_v62 }
 0x252   : > { %v4882_v40 = vpop.permute.xlu0 %1783  ;;  %v4884_v45 = vpop.permute.xlu1 %1788 }
 0x253   : > { %5413 = vst [vmem:[#allocation44_spill] sm:$0xff] %v4882_v40  ;;  %5414 = vst [vmem:[#allocation17_spill] sm:$0xff] %v4884_v45 }
 0x256   : > { %2244 = vmatmul.mubr.bf16.gmra.mxu1 %v3553_v37  ;;  %2405 = vmatmul.mubr.bf16.gmra.mxu0 %v3556_v10 }
 0x257   : > { %2251 = vmatprep.mubr.bf16.mxu1 %v3557_v21  ;;  %2412 = vmatprep.mubr.bf16.mxu0 %v3560_v58  ;;  %v4886_v21 = vpop.permute.xlu0 %2559 }
 0x25e   : > { %2252 = vmatmul.mubr.bf16.gmra.mxu1 %v3559_v30  ;;  %2413 = vmatmul.mubr.bf16.gmra.mxu0 %v3562_v52 }
 0x25f   : > { %2259 = vmatprep.mubr.bf16.mxu1 %v3563_v27  ;;  %2420 = vmatprep.mubr.bf16.mxu0 %v3566_v5  ;;  %v4892_v5 = vpop.permute.xlu1 %2564 }
 0x266   : > { %2260 = vmatmul.mubr.bf16.gmra.mxu1 %v3565_v19  ;;  %2421 = vmatmul.mubr.bf16.gmra.mxu0 %v3568_v56 }
 0x267   : > { %2267 = vmatprep.mubr.bf16.mxu1 %v3569_v63  ;;  %2428 = vmatprep.mubr.bf16.mxu0 %v3572_v60 }
 0x26e   : > { %2268 = vmatmul.mubr.bf16.gmra.mxu1 %v3571_v41  ;;  %2429 = vmatmul.mubr.bf16.gmra.mxu0 %v3574_v13 }
 0x26f   : > { %2275 = vmatprep.mubr.bf16.mxu1 %v3575_v33  ;;  %2436 = vmatprep.mubr.bf16.mxu0 %v3578_v0  ;;  %v4902_v33 = vpop.permute.xlu0 %2569 }
 0x276   : > { %2276 = vmatmul.mubr.bf16.gmra.mxu1 %v3577_v17  ;;  %2437 = vmatmul.mubr.bf16.gmra.mxu0 %v3580_v59  ;;  %v4906_v59 = vpop.permute.xlu1 %2574 }
 0x277   : > { %2283 = vmatprep.mubr.bf16.mxu1 %v3581_v23  ;;  %2444 = vmatprep.mubr.bf16.mxu0 %v3584_v31 }
 0x27e   : > { %2284 = vmatmul.mubr.bf16.gmra.mxu1 %v3583_v2  ;;  %2445 = vmatmul.mubr.bf16.gmra.mxu0 %v3586_v44 }
 0x27f   : > { %2291 = vmatprep.mubr.bf16.mxu1 %v3587_v43  ;;  %2452 = vmatprep.mubr.bf16.mxu0 %v3590_v47  ;;  %v4912_v43 = vpop.permute.xlu0 %2579 }
 0x286   : > { %2292 = vmatmul.mubr.bf16.gmra.mxu1 %v3589_v15  ;;  %2453 = vmatmul.mubr.bf16.gmra.mxu0 %v3592_v57  ;;  %v4916_v57 = vpop.permute.xlu1 %2584 }
 0x287   : > { %2299 = vmatprep.mubr.bf16.mxu1 %v3593_v48  ;;  %2460 = vmatprep.mubr.bf16.mxu0 %v3596_v28  ;;  %5415 = vst [vmem:[#allocation45_spill] sm:$0xff] %v4916_v57 }
 0x28e   : > { %2300 = vmatmul.mubr.bf16.gmra.mxu1 %v3595_v3  ;;  %2461 = vmatmul.mubr.bf16.gmra.mxu0 %v3598_v16 }
 0x28f   : > { %2307 = vmatprep.mubr.bf16.mxu1 %v3599_v22  ;;  %2468 = vmatprep.mubr.bf16.mxu0 %v3602_v49  ;;  %v4924_v22 = vpop.permute.xlu0 %2589 }
 0x290   : > { %5416 = vst [vmem:[#allocation14_spill] sm:$0xff] %v4924_v22 }
 0x296   : > { %2308 = vmatmul.mubr.bf16.gmra.mxu1 %v3601_v8  ;;  %2469 = vmatmul.mubr.bf16.gmra.mxu0 %v3604_v51  ;;  %v4928_v51 = vpop.permute.xlu1 %2594 }
 0x297   : > { %2315 = vmatprep.mubr.bf16.mxu1 %v3605_v42  ;;  %2476 = vmatprep.mubr.bf16.mxu0 %v3608_v6  ;;  %5417 = vst [vmem:[#allocation42_spill] sm:$0xff] %v4928_v51 }
 0x29e   : > { %2316 = vmatmul.mubr.bf16.gmra.mxu1 %v3607_v1  ;;  %2477 = vmatmul.mubr.bf16.gmra.mxu0 %v3610_v35 }
 0x29f   : > { %2323 = vmatprep.mubr.bf16.mxu1 %v3611_v14  ;;  %2484 = vmatprep.mubr.bf16.mxu0 %v3614_v20  ;;  %v4936_v14 = vpop.permute.xlu0 %2599 }
 0x2a0   : > { %5418 = vst [vmem:[#allocation16_spill] sm:$0xff] %v4936_v14 }
 0x2a6   : > { %2324 = vmatmul.mubr.bf16.gmra.mxu1 %v3613_v4  ;;  %2485 = vmatmul.mubr.bf16.gmra.mxu0 %v3616_v61  ;;  %v4942_v61 = vpop.permute.xlu1 %2604 }
 0x2a7   : > { %5419 = vst [vmem:[#allocation43_spill] sm:$0xff] %v4942_v61 }
 0x2ee   : > { %v3133_v12 = vpop.f32.mrf.mxu1  ;;  %v3245_v24 = vpop.f32.mrf.mxu0 }
 0x2f0   : > { %v3134_v37 = vpop.f32.mrf.mxu1  ;;  %v3246_v10 = vpop.f32.mrf.mxu0 }
 0x2f1   : > { %v3135_v58 = vadd.f32 %v3134_v37, %v3133_v12  ;;  %v3247_v30 = vadd.f32 %v3246_v10, %v3245_v24  ;;  %v4952_v10 = vpop.permute.xlu0 %2609 }
 0x2f2   : > { %v4888_v52 = vpop.f32.mrf.mxu1  ;;  %v4890_v27 = vpop.f32.mrf.mxu0  ;;  %5420 = vst [vmem:[#allocation19_spill] sm:$0xff] %v4952_v10 }
 0x2f3   : > { %v2206_v19 = vadd.f32 %v3135_v58, %v1694_v11 }
 0x2f4   : > { %v3137_v56 = vpop.f32.mrf.mxu1  ;;  %v4894_v63 = vpop.f32.mrf.mxu0 }
 0x2f5   : > { %v4896_v60 = vadd.f32 %v3247_v30, %v2206_v19  ;;  %v4958_v19 = vpop.permute.xlu1 %2614  ;;  %v4968_v39 = vpop.permute.xlu0 %2619 }
 0x2f6   : > { %v4898_v41 = vpop.f32.mrf.mxu1  ;;  %v4900_v13 = vpop.f32.mrf.mxu0  ;;  %5421 = vst [vmem:[#allocation38_spill] sm:$0xff] %v4958_v19  ;;  %5424 = vst [vmem:[#allocation18_spill] sm:$0xff] %v4968_v39 }
 0x2f8   : > { %v3140_v0 = vpop.f32.mrf.mxu1  ;;  %v4904_v17 = vpop.f32.mrf.mxu0 }
 0x2f9   : > { %v4974_v10 = vpop.permute.xlu1 %2624  ;;  %v4984_v51 = vpop.permute.xlu0 %2629 }
 0x2fa   : > { %v3142_v23 = vpop.f32.mrf.mxu1  ;;  %v4908_v31 = vpop.f32.mrf.mxu0  ;;  %5426 = vst [vmem:[#allocation20_spill] sm:$0xff] %v4974_v10  ;;  %5429 = vst [vmem:[#allocation40_spill] sm:$0xff] %v4984_v51  ;;  %v3138_v10 = vadd.f32 %v3137_v56, %v4888_v52  ;;  %v3250_v56 = vadd.f32 %v4894_v63, %v4890_v27 }
 0x2fc   : > { %v3143_v2 = vpop.f32.mrf.mxu1  ;;  %v4910_v44 = vpop.f32.mrf.mxu0 }
 0x2fd   : > { %v4990_v39 = vpop.permute.xlu1 %2634  ;;  %v5001_v36 = vpop.permute.xlu0 %2639  ;;  %v3144_v52 = vadd.f32 %v3143_v2, %v3142_v23  ;;  %v3253_v23 = vadd.f32 %v4904_v17, %v4900_v13 }
 0x2fe   : > { %v3145_v47 = vpop.f32.mrf.mxu1  ;;  %v4914_v15 = vpop.f32.mrf.mxu0  ;;  %5431 = vst [vmem:[#allocation41_spill] sm:$0xff] %v4990_v39  ;;  %5435 = vst [vmem:[#allocation36_spill] sm:$0xff] %v5001_v36  ;;  %v3141_v39 = vadd.f32 %v3140_v0, %v4898_v41 }
 0x2ff   : > { %v2217_v27 = vadd.f32 %v3144_v52, %v4852_v29 }
 0x300   : > { %v3146_v48 = vpop.f32.mrf.mxu1  ;;  %v4918_v28 = vpop.f32.mrf.mxu0 }
 0x301   : > { %v5007_v57 = vpop.permute.xlu1 %1793  ;;  %v3259_v13 = vadd.f32 %v4918_v28, %v4914_v15 }
 0x302   : > { %v4920_v3 = vpop.f32.mrf.mxu1  ;;  %v4922_v16 = vpop.f32.mrf.mxu0  ;;  %5438 = vst [vmem:[#allocation32_spill] sm:$0xff] %v5007_v57  ;;  %v2214_v57 = vadd.f32 %v3141_v39, %v4850_v55  ;;  %v3256_v39 = vadd.f32 %v4910_v44, %v4908_v31 }
 0x304   : > { %v3149_v49 = vpop.f32.mrf.mxu1  ;;  %v4926_v8 = vpop.f32.mrf.mxu0  ;;  %v2375_v55 = vadd.f32 %v3253_v23, %v2214_v57  ;;  %v2493_v57 = vmax.f32 %v4896_v60, 0.0 }
 0x305   : > { %v3150_v63 = vadd.f32 %v3149_v49, %v4920_v3 }
 0x306   : > { %v4930_v42 = vpop.f32.mrf.mxu1  ;;  %v4932_v6 = vpop.f32.mrf.mxu0  ;;  %v2495_v28 = vmax.f32 %v2375_v55, 0.0 }
 0x308   : > { %v3152_v1 = vpop.f32.mrf.mxu1  ;;  %v4934_v35 = vpop.f32.mrf.mxu0 }
 0x30a   : > { %v4938_v20 = vpop.f32.mrf.mxu1  ;;  %v4940_v4 = vpop.f32.mrf.mxu0 }
 0x30c   : > { %v4944_v11 = vpop.f32.mrf.mxu1  ;;  %v4946_v12 = vpop.f32.mrf.mxu0 }
 0x30d   : > { %v3156_v31 = vadd.f32 %v4944_v11, %v4938_v20 }
 0x30e   : > { %v4948_v24 = vpop.f32.mrf.mxu1  ;;  %v4950_v37 = vpop.f32.mrf.mxu0 }
 0x310   : > { %v4954_v58 = vpop.f32.mrf.mxu1  ;;  %v4956_v30 = vpop.f32.mrf.mxu0 }
 0x312   : > { %v4960_v45 = vpop.f32.mrf.mxu1  ;;  %v4962_v40 = vpop.f32.mrf.mxu0 }
 0x313   : > { %5422 = vst [vmem:[#allocation21_spill] sm:$0xff] %v4962_v40 }
 0x314   : > { %v4964_v62 = vpop.f32.mrf.mxu1  ;;  %v4966_v53 = vpop.f32.mrf.mxu0 }
 0x315   : > { %5423 = vst [vmem:[#allocation39_spill] sm:$0xff] %v4966_v53 }
 0x316   : > { %v4970_v61 = vpop.f32.mrf.mxu1  ;;  %v4972_v54 = vpop.f32.mrf.mxu0 }
 0x317   : > { %5425 = vst [vmem:[#allocation34_spill] sm:$0xff] %v4972_v54 }
 0x318   : > { %v4976_v46 = vpop.f32.mrf.mxu1  ;;  %v4978_v7 = vpop.f32.mrf.mxu0 }
 0x319   : > { %5427 = vst [vmem:[#allocation35_spill] sm:$0xff] %v4978_v7 }
 0x31a   : > { %v4980_v19 = vpop.f32.mrf.mxu1  ;;  %v4982_v14 = vpop.f32.mrf.mxu0 }
 0x31b   : > { %5428 = vst [vmem:[#allocation23_spill] sm:$0xff] %v4982_v14 }
 0x31c   : > { %v4986_v38 = vpop.f32.mrf.mxu1  ;;  %v4988_v22 = vpop.f32.mrf.mxu0 }
 0x31d   : > { %5430 = vst [vmem:[#allocation25_spill] sm:$0xff] %v4988_v22  ;;  %v2209_v22 = vadd.f32 %v3138_v10, %v4848_v9  ;;  %v5028_v10 = vpop.permute.xlu1 %1798 }
 0x31e   : > { %v4992_v53 = vpop.f32.mrf.mxu1  ;;  %v4994_v54 = vpop.f32.mrf.mxu0 }
 0x31f   : > { %5432 = vst [vmem:[#allocation30_spill] sm:$0xff] %v4992_v53  ;;  %5433 = vst [vmem:[#allocation31_spill] sm:$0xff] %v4994_v54  ;;  %v2370_v41 = vadd.f32 %v3250_v56, %v2209_v22  ;;  %v3153_v22 = vadd.f32 %v3152_v1, %v4930_v42  ;;  %v3262_v1 = vadd.f32 %v4926_v8, %v4922_v16 }
 0x320   : > { %v4997_v40 = vpop.f32.mrf.mxu1  ;;  %v4999_v7 = vpop.f32.mrf.mxu0 }
 0x321   : > { %5434 = vst [vmem:[#allocation22_spill] sm:$0xff] %v4999_v7  ;;  %v3147_v7 = vadd.f32 %v3146_v48, %v3145_v47  ;;  %v2494_v56 = vmax.f32 %v2370_v41, 0.0  ;;  %v5058_v15 = vpop.permute.xlu1 %1803  ;;  %v2230_v52 = vadd.f32 %v3153_v22, %v4858_v34 }
 0x322   : > { %v5003_v14 = vpop.f32.mrf.mxu1  ;;  %v5005_v51 = vpop.f32.mrf.mxu0 }
 0x323   : > { %5436 = vst [vmem:[#allocation24_spill] sm:$0xff] %v5003_v14  ;;  %5437 = vst [vmem:[#allocation37_spill] sm:$0xff] %v5005_v51  ;;  %v5021_v51 = vpop.permute.xlu0 %2644  ;;  %v2222_v2 = vadd.f32 %v3147_v7, %v4854_v26  ;;  %v2378_v26 = vadd.f32 %v3256_v39, %v2217_v27  ;;  %v2225_v7 = vadd.f32 %v3150_v63, %v4856_v32 }
 0x324   : > { %v5011_v53 = vpop.f32.mrf.mxu1  ;;  %v5013_v54 = vpop.f32.mrf.mxu0  ;;  %v3159_v32 = vadd.f32 %v4954_v58, %v4948_v24  ;;  %v2718_v60 = vmul.f32 %v4892_v5, %v2494_v56  ;;  %v3265_v27 = vadd.f32 %v4934_v35, %v4932_v6  ;;  %v2717_v5 = vmul.f32 %v4886_v21, %v2493_v57 }
 0x325   : > { %v2383_v49 = vadd.f32 %v3259_v13, %v2222_v2  ;;  %v2496_v11 = vmax.f32 %v2378_v26, 0.0  ;;  %v2386_v23 = vadd.f32 %v3262_v1, %v2225_v7  ;;  %v2233_v2 = vadd.f32 %v3156_v31, %v4860_v50  ;;  %v5091_v56 = vpop.permute.xlu1 %1808 }
 0x326   : > { %v5017_v36 = vpop.f32.mrf.mxu1  ;;  %v5019_v14 = vpop.f32.mrf.mxu0  ;;  %v2719_v24 = vmul.f32 %v4902_v33, %v2495_v28  ;;  %v2391_v58 = vadd.f32 %v3265_v27, %v2230_v52  ;;  %v2238_v55 = vadd.f32 %v3159_v32, %v4862_v18  ;;  %v2750_v39 = vsel %vm363_vm0, %v2718_v60, 0.0  ;;  %v5439_v28 = vld [vmem:[#allocation45_spill] sm:$0xff]  ;;  %v5440_v52 = vld [vmem:[#allocation7_spill] sm:$0xff] }
 0x327   : > { %v5048_v3 = vpop.permute.xlu0 %2649  ;;  %v2497_v63 = vmax.f32 %v2383_v49, 0.0  ;;  %v3268_v6 = vadd.f32 %v4946_v12, %v4940_v4  ;;  %v3162_v50 = vadd.f32 %v4964_v62, %v4960_v45  ;;  %v2720_v21 = vmul.f32 %v4906_v59, %v2496_v11  ;;  %v5442_v27 = vld [vmem:[#allocation39_spill] sm:$0xff] }
 0x328   : > { %v5024_v0 = vpop.f32.mrf.mxu1  ;;  %v5026_v9 = vpop.f32.mrf.mxu0  ;;  %v2498_v33 = vmax.f32 %v2386_v23, 0.0  ;;  %v3271_v18 = vadd.f32 %v4956_v30, %v4950_v37  ;;  %v3165_v13 = vadd.f32 %v4976_v46, %v4970_v61  ;;  %v2749_v45 = vsel %vm363_vm0, %v2717_v5, 0.0  ;;  %v5443_v5 = vld [vmem:[#allocation14_spill] sm:$0xff] }
 0x329   : > { %v2721_v4 = vmul.f32 %v4912_v43, %v2497_v63  ;;  %v2394_v12 = vadd.f32 %v3268_v6, %v2233_v2  ;;  %v2752_v7 = vsel %vm363_vm0, %v2719_v24, 0.0  ;;  %v2499_v57 = vmax.f32 %v2391_v58, 0.0  ;;  %v5124_v2 = vpop.permute.xlu1 %1813 }
 0x32a   : > { %v5035_v47 = vpop.f32.mrf.mxu1  ;;  %v5037_v48 = vpop.f32.mrf.mxu0  ;;  %v2399_v59 = vadd.f32 %v3271_v18, %v2238_v55  ;;  %v2751_v49 = vadd.f32 %v2750_v39, %v2749_v45  ;;  %v2241_v31 = vadd.f32 %v3162_v50, %v4864_v25  ;;  %v3168_v37 = vadd.f32 %v4986_v38, %v4980_v19  ;;  %v5441_v25 = vld [vmem:[#allocation21_spill] sm:$0xff]  ;;  %v5444_v55 = vld [vmem:[#allocation34_spill] sm:$0xff]  ;;  %v5445_v39 = vld [vmem:[#allocation35_spill] sm:$0xff] }
 0x32b   : > { %v5077_v8 = vpop.permute.xlu0 %2654  ;;  %v2754_v30 = vsel %vm363_vm0, %v2720_v21, 0.0  ;;  %v2722_v1 = vmul.f32 %v5439_v28, %v2498_v33  ;;  %v2246_v32 = vadd.f32 %v3165_v13, %v5440_v52  ;;  %v2756_v11 = vsel %vm363_vm0, %v2721_v4, 0.0  ;;  %v5446_v50 = vld [vmem:[#allocation30_spill] sm:$0xff]  ;;  %v5447_v13 = vld [vmem:[#allocation8_spill] sm:$0xff] }
 0x32c   : > { %v5044_v17 = vpop.f32.mrf.mxu1  ;;  %v5046_v29 = vpop.f32.mrf.mxu0  ;;  %v2753_v60 = vadd.f32 %v2752_v7, %v2751_v49  ;;  %v2500_v23 = vmax.f32 %v2394_v12, 0.0  ;;  %v3274_v63 = vadd.f32 %v5442_v27, %v5441_v25  ;;  %v2723_v24 = vmul.f32 %v5443_v5, %v2499_v57  ;;  %v5448_v28 = vld [vmem:[#allocation24_spill] sm:$0xff]  ;;  %v5449_v52 = vld [vmem:[#allocation42_spill] sm:$0xff]  ;;  %v5450_v27 = vld [vmem:[#allocation23_spill] sm:$0xff] }
 0x32d   : > { %v2501_v58 = vmax.f32 %v2399_v59, 0.0  ;;  %v3277_v6 = vadd.f32 %v5445_v39, %v5444_v55  ;;  %v3171_v21 = vadd.f32 %v4997_v40, %v5446_v50  ;;  %v2249_v4 = vadd.f32 %v3168_v37, %v5447_v13  ;;  %v5451_v5 = vld [vmem:[#allocation25_spill] sm:$0xff]  ;;  %v5455_v13 = vld [vmem:[#allocation22_spill] sm:$0xff] }
 0x32e   : > { %v5054_v44 = vpop.f32.mrf.mxu1  ;;  %v5056_v42 = vpop.f32.mrf.mxu0  ;;  %v2755_v33 = vadd.f32 %v2754_v30, %v2753_v60  ;;  %v2402_v18 = vadd.f32 %v3274_v63, %v2241_v31  ;;  %v2758_v7 = vsel %vm363_vm0, %v2722_v1, 0.0  ;;  %v3174_v57 = vadd.f32 %v5011_v53, %v5448_v28  ;;  %v5453_v63 = vld [vmem:[#allocation11_spill] sm:$0xff] }
 0x32f   : > { %v5112_v61 = vpop.permute.xlu0 %2659  ;;  %v2407_v49 = vadd.f32 %v3277_v6, %v2246_v32  ;;  %v2724_v25 = vmul.f32 %v5449_v52, %v2500_v23  ;;  %v3280_v55 = vadd.f32 %v5451_v5, %v5450_v27  ;;  %v3177_v40 = vadd.f32 %v5024_v0, %v5017_v36  ;;  %v5452_v32 = vld [vmem:[#allocation16_spill] sm:$0xff]  ;;  %v5454_v0 = vld [vmem:[#allocation31_spill] sm:$0xff]  ;;  %v5456_v52 = vld [vmem:[#allocation13_spill] sm:$0xff] }
 0x330   : > { %v5066_v41 = vpop.f32.mrf.mxu1  ;;  %v5068_v20 = vpop.f32.mrf.mxu0  ;;  %v2757_v59 = vadd.f32 %v2756_v11, %v2755_v33  ;;  %v2760_v1 = vsel %vm363_vm0, %v2723_v24, 0.0  ;;  %v2725_v60 = vmul.f32 %v5452_v32, %v2501_v58  ;;  %v2254_v53 = vadd.f32 %v3171_v21, %v5453_v63  ;;  %v5459_v63 = vld [vmem:[#allocation43_spill] sm:$0xff] }
 0x331   : > { %v2502_v39 = vmax.f32 %v2402_v18, 0.0  ;;  %v2410_v23 = vadd.f32 %v3280_v55, %v2249_v4  ;;  %v5151_v33 = vpop.permute.xlu1 %1818  ;;  %v2503_v36 = vmax.f32 %v2407_v49, 0.0  ;;  %v3283_v28 = vadd.f32 %v5455_v13, %v5454_v0  ;;  %v5458_v49 = vld [vmem:[#allocation37_spill] sm:$0xff] }
 0x332   : > { %v5073_v16 = vpop.f32.mrf.mxu1  ;;  %v5075_v34 = vpop.f32.mrf.mxu0  ;;  %v2759_v11 = vadd.f32 %v2758_v7, %v2757_v59  ;;  %v2257_v27 = vadd.f32 %v3174_v57, %v5456_v52  ;;  %v3180_v24 = vadd.f32 %v5044_v17, %v5035_v47  ;;  %v2762_v21 = vsel %vm363_vm0, %v2724_v25, 0.0  ;;  %v5457_v7 = vld [vmem:[#allocation9_spill] sm:$0xff] }
 0x333   : > { %v5144_v30 = vpop.permute.xlu0 %2664  ;;  %v2262_v18 = vadd.f32 %v3177_v40, %v5457_v7  ;;  %v2764_v5 = vsel %vm363_vm0, %v2725_v60, 0.0  ;;  %v2415_v55 = vadd.f32 %v3283_v28, %v2254_v53  ;;  %v3286_v32 = vadd.f32 %v5013_v54, %v5458_v49  ;;  %v5461_v28 = vld [vmem:[#allocation10_spill] sm:$0xff]  ;;  %v5464_v7 = vld [vmem:[#allocation15_spill] sm:$0xff] }
 0x334   : > { %v5087_v35 = vpop.f32.mrf.mxu1  ;;  %v5089_v22 = vpop.f32.mrf.mxu0  ;;  %v2761_v58 = vadd.f32 %v2760_v1, %v2759_v11  ;;  %v3183_v57 = vadd.f32 %v5066_v41, %v5054_v44  ;;  %v2726_v0 = vmul.f32 %v5459_v63, %v2502_v39  ;;  %v2504_v47 = vmax.f32 %v2410_v23, 0.0  ;;  %v5460_v11 = vld [vmem:[#allocation19_spill] sm:$0xff]  ;;  %v5465_v63 = vld [vmem:[#allocation44_spill] sm:$0xff] }
 0x335   : > { %v3289_v17 = vadd.f32 %v5026_v9, %v5019_v14  ;;  %v3186_v25 = vadd.f32 %v5087_v35, %v5073_v16  ;;  %v2727_v54 = vmul.f32 %v5460_v11, %v2503_v36  ;;  %v2418_v13 = vadd.f32 %v3286_v32, %v2257_v27  ;;  %v5182_v9 = vpop.permute.xlu1 %1823  ;;  %v5463_v27 = vld [vmem:[#allocation38_spill] sm:$0xff] }
 0x336   : > { %v5099_v26 = vpop.f32.mrf.mxu1  ;;  %v5101_v62 = vpop.f32.mrf.mxu0  ;;  %v2763_v53 = vadd.f32 %v2762_v21, %v2761_v58  ;;  %v2265_v44 = vadd.f32 %v3180_v24, %v5461_v28  ;;  %v2505_v35 = vmax.f32 %v2415_v55, 0.0  ;;  %v3292_v52 = vadd.f32 %v5046_v29, %v5037_v48  ;;  %v5462_v58 = vld [vmem:[#allocation12_spill] sm:$0xff] }
 0x337   : > { %v5174_v60 = vpop.permute.xlu0 %2669  ;;  %v2423_v41 = vadd.f32 %v3289_v17, %v2262_v18  ;;  %v2270_v21 = vadd.f32 %v3183_v57, %v5462_v58  ;;  %v2766_v36 = vsel %vm363_vm0, %v2726_v0, 0.0  ;;  %v2728_v24 = vmul.f32 %v5463_v27, %v2504_v47  ;;  %v5469_v58 = vld [vmem:[#allocation40_spill] sm:$0xff] }
 0x338   : > { %v5108_v46 = vpop.f32.mrf.mxu1  ;;  %v5110_v43 = vpop.f32.mrf.mxu0  ;;  %v2765_v16 = vadd.f32 %v2764_v5, %v2763_v53  ;;  %v2273_v18 = vadd.f32 %v3186_v25, %v5464_v7  ;;  %v2768_v32 = vsel %vm363_vm0, %v2727_v54, 0.0  ;;  %v2506_v5 = vmax.f32 %v2418_v13, 0.0  ;;  %v5466_v53 = vld [vmem:[#allocation18_spill] sm:$0xff]  ;;  %v5470_v27 = vld [vmem:[#allocation32_spill] sm:$0xff] }
 0x339   : > { %v3189_v39 = vadd.f32 %v5108_v46, %v5099_v26  ;;  %v2426_v55 = vadd.f32 %v3292_v52, %v2265_v44  ;;  %v3295_v48 = vadd.f32 %v5068_v20, %v5056_v42  ;;  %v2507_v29 = vmax.f32 %v2423_v41, 0.0  ;;  %v5467_v20 = vld [vmem:[#allocation17_spill] sm:$0xff]  ;;  %v5206_v41 = vpop.permute.xlu1 %1828 }
 0x33a   : > { %v5120_v38 = vpop.f32.mrf.mxu1  ;;  %v5122_v19 = vpop.f32.mrf.mxu0  ;;  %v3298_v57 = vadd.f32 %v5089_v22, %v5075_v34  ;;  %v2729_v11 = vmul.f32 %v5466_v53, %v2505_v35  ;;  %v2770_v13 = vsel %vm363_vm0, %v2728_v24, 0.0  ;;  %v3301_v42 = vadd.f32 %v5110_v43, %v5101_v62 }
 0x33b   : > { %v2278_v0 = vadd.f32 %v3189_v39, %v5465_v63  ;;  %v2431_v54 = vadd.f32 %v3295_v48, %v2270_v21  ;;  %v2508_v52 = vmax.f32 %v2426_v55, 0.0  ;;  %v2731_v35 = vmul.f32 %v5469_v58, %v2507_v29 }
 0x33c   : > { %v3191_v12 = vpop.f32.mrf.mxu1  ;;  %v5132_v45 = vpop.f32.mrf.mxu0  ;;  %v2434_v28 = vadd.f32 %v3298_v57, %v2273_v18  ;;  %v2772_v18 = vsel %vm363_vm0, %v2729_v11, 0.0 }
 0x33d   : > { %v3192_v26 = vadd.f32 %v3191_v12, %v5120_v38  ;;  %v5199_v38 = vpop.permute.xlu0 %2674  ;;  %v2767_v12 = vadd.f32 %v2766_v36, %v2765_v16  ;;  %v2439_v21 = vadd.f32 %v3301_v42, %v2278_v0  ;;  %v3304_v36 = vadd.f32 %v5132_v45, %v5122_v19  ;;  %v5471_v45 = vld [vmem:[#allocation41_spill] sm:$0xff] }
 0x33e   : > { %v3193_v31 = vpop.f32.mrf.mxu1  ;;  %v5142_v37 = vpop.f32.mrf.mxu0  ;;  %v2732_v63 = vmul.f32 %v5471_v45, %v2508_v52 }
 0x33f   : > { %v2281_v44 = vadd.f32 %v3192_v26, %v5467_v20  ;;  %v2509_v26 = vmax.f32 %v2431_v54, 0.0  ;;  %v5222_v54 = vpop.permute.xlu1 %1833 }
 0x340   : > { %v3194_v6 = vpop.f32.mrf.mxu1  ;;  %v5149_v50 = vpop.f32.mrf.mxu0 }
 0x341   : > { %v3195_v47 = vadd.f32 %v3194_v6, %v3193_v31  ;;  %v2769_v31 = vadd.f32 %v2768_v32, %v2767_v12  ;;  %v5468_v6 = vld [vmem:[#allocation20_spill] sm:$0xff]  ;;  %v2510_v32 = vmax.f32 %v2434_v28, 0.0  ;;  %v2442_v57 = vadd.f32 %v3304_v36, %v2281_v44  ;;  %v5216_v29 = vpop.permute.xlu0 %2679 }
 0x342   : > { %v3196_v4 = vpop.f32.mrf.mxu1  ;;  %v5160_v59 = vpop.f32.mrf.mxu0  ;;  %v2730_v39 = vmul.f32 %v5468_v6, %v2506_v5  ;;  %v2776_v12 = vsel %vm363_vm0, %v2731_v35, 0.0  ;;  %v2778_v6 = vsel %vm363_vm0, %v2732_v63, 0.0 }
 0x343   : > { %v2286_v24 = vadd.f32 %v3195_v47, %v5470_v27  ;;  %v2771_v7 = vadd.f32 %v2770_v13, %v2769_v31  ;;  %v2512_v20 = vmax.f32 %v2442_v57, 0.0 }
 0x344   : > { %v3197_v40 = vpop.f32.mrf.mxu1  ;;  %v5172_v1 = vpop.f32.mrf.mxu0  ;;  %v2774_v19 = vsel %vm363_vm0, %v2730_v39, 0.0 }
 0x345   : > { %v3198_v16 = vadd.f32 %v3197_v40, %v3196_v4  ;;  %v3307_v4 = vadd.f32 %v5149_v50, %v5142_v37  ;;  %v2773_v47 = vadd.f32 %v2772_v18, %v2771_v7  ;;  %v5472_v37 = vld [vmem:[#allocation36_spill] sm:$0xff] }
 0x346   : > { %v3199_v23 = vpop.f32.mrf.mxu1  ;;  %v5180_v14 = vpop.f32.mrf.mxu0  ;;  %v2733_v50 = vmul.f32 %v5472_v37, %v2509_v26 }
 0x347   : > { %v2289_v0 = vadd.f32 %v3198_v16, %v5028_v10  ;;  %v2775_v42 = vadd.f32 %v2774_v19, %v2773_v47  ;;  %v2734_v10 = vmul.f32 %v5021_v51, %v2510_v32  ;;  %v5234_v51 = vpop.permute.xlu0 %2684 }
 0x348   : > { %v3200_v46 = vpop.f32.mrf.mxu1  ;;  %v5191_v49 = vpop.f32.mrf.mxu0 }
 0x349   : > { %v3201_v48 = vadd.f32 %v3200_v46, %v3199_v23  ;;  %v2511_v23 = vmax.f32 %v2439_v21, 0.0  ;;  %v2447_v46 = vadd.f32 %v3307_v4, %v2286_v24  ;;  %v3313_v52 = vadd.f32 %v5191_v49, %v5180_v14 }
 0x34a   : > { %v3202_v17 = vpop.f32.mrf.mxu1  ;;  %v3314_v25 = vpop.f32.mrf.mxu0  ;;  %v2777_v58 = vadd.f32 %v2776_v12, %v2775_v42  ;;  %v2736_v14 = vmul.f32 %v5077_v8, %v2512_v20 }
 0x34b   : > { %v2294_v13 = vadd.f32 %v3201_v48, %v5058_v15  ;;  %v2513_v15 = vmax.f32 %v2447_v46, 0.0 }
 0x34c   : > { %v3203_v34 = vpop.f32.mrf.mxu1  ;;  %v3315_v22 = vpop.f32.mrf.mxu0  ;;  %v2779_v24 = vadd.f32 %v2778_v6, %v2777_v58 }
 0x34d   : > { %v3204_v40 = vadd.f32 %v3203_v34, %v3202_v17  ;;  %v3310_v17 = vadd.f32 %v5172_v1, %v5160_v59  ;;  %v2735_v59 = vmul.f32 %v5048_v3, %v2511_v23  ;;  %v3316_v1 = vadd.f32 %v3315_v22, %v3314_v25  ;;  %v5240_v3 = vpop.permute.xlu1 %1838 }
 0x34e   : > { %v3205_v62 = vpop.f32.mrf.mxu1  ;;  %v3317_v43 = vpop.f32.mrf.mxu0  ;;  %v2455_v36 = vadd.f32 %v3313_v52, %v2294_v13 }
 0x34f   : > { %v2297_v44 = vadd.f32 %v3204_v40, %v5091_v56  ;;  %v2450_v39 = vadd.f32 %v3310_v17, %v2289_v0  ;;  %v2780_v56 = vsel %vm363_vm0, %v2733_v50, 0.0  ;;  %v2784_v57 = vsel %vm363_vm0, %v2735_v59, 0.0 }
 0x350   : > { %v3206_v5 = vpop.f32.mrf.mxu1  ;;  %v3318_v55 = vpop.f32.mrf.mxu0  ;;  %v2781_v32 = vadd.f32 %v2780_v56, %v2779_v24 }
 0x351   : > { %v3207_v28 = vadd.f32 %v3206_v5, %v3205_v62  ;;  %v2782_v62 = vsel %vm363_vm0, %v2734_v10, 0.0  ;;  %v2458_v49 = vadd.f32 %v3316_v1, %v2297_v44  ;;  %v2514_v25 = vmax.f32 %v2450_v39, 0.0  ;;  %v1844_v13 = vpop.permute.xlu1 %1843 }
 0x352   : > { %v3208_v53 = vpop.f32.mrf.mxu1  ;;  %v3320_v11 = vpop.f32.mrf.mxu0  ;;  %v3319_v22 = vadd.f32 %v3318_v55, %v3317_v43  ;;  %v2515_v5 = vmax.f32 %v2455_v36, 0.0  ;;  %v2783_v63 = vadd.f32 %v2782_v62, %v2781_v32 }
 0x353   : > { %v2302_v27 = vadd.f32 %v3207_v28, %v5124_v2  ;;  %v2737_v2 = vmul.f32 %v5112_v61, %v2513_v15  ;;  %v2516_v0 = vmax.f32 %v2458_v49, 0.0  ;;  %v2690_v55 = vpop.permute.xlu0 %2689  ;;  %v2738_v23 = vmul.f32 %v5144_v30, %v2514_v25 }
 0x354   : > { %v3209_v34 = vpop.f32.mrf.mxu1  ;;  %v3321_v31 = vpop.f32.mrf.mxu0  ;;  %v2785_v61 = vadd.f32 %v2784_v57, %v2783_v63 }
 0x355   : > { %v3210_v16 = vadd.f32 %v3209_v34, %v3208_v53  ;;  %v2463_v19 = vadd.f32 %v3319_v22, %v2302_v27  ;;  %v3322_v8 = vadd.f32 %v3321_v31, %v3320_v11  ;;  %v2788_v37 = vsel %vm363_vm0, %v2737_v2, 0.0  ;;  %v1849_v24 = vpop.permute.xlu1 %1848 }
 0x356   : > { %v3211_v35 = vpop.f32.mrf.mxu1  ;;  %v3323_v21 = vpop.f32.mrf.mxu0  ;;  %v2740_v44 = vmul.f32 %v5199_v38, %v2516_v0  ;;  %v2790_v31 = vsel %vm363_vm0, %v2738_v23, 0.0 }
 0x357   : > { %v2305_v26 = vadd.f32 %v3210_v16, %v5151_v33  ;;  %v2786_v33 = vsel %vm363_vm0, %v2736_v14, 0.0  ;;  %v2517_v28 = vmax.f32 %v2463_v19, 0.0  ;;  %v2695_v1 = vpop.permute.xlu0 %2694 }
 0x358   : > { %v3212_v7 = vpop.f32.mrf.mxu1  ;;  %v3324_v18 = vpop.f32.mrf.mxu0  ;;  %v2787_v20 = vadd.f32 %v2786_v33, %v2785_v61  ;;  %v2794_v56 = vsel %vm363_vm0, %v2740_v44, 0.0 }
 0x359   : > { %v3213_v48 = vadd.f32 %v3212_v7, %v3211_v35  ;;  %v3325_v47 = vadd.f32 %v3324_v18, %v3323_v21  ;;  %v2466_v46 = vadd.f32 %v3322_v8, %v2305_v26 }
 0x35a   : > { %v3214_v4 = vpop.f32.mrf.mxu1  ;;  %v3326_v40 = vpop.f32.mrf.mxu0  ;;  %v2789_v16 = vadd.f32 %v2788_v37, %v2787_v20 }
 0x35b   : > { %v2310_v45 = vadd.f32 %v3213_v48, %v5182_v9  ;;  %v2739_v9 = vmul.f32 %v5174_v60, %v2515_v5  ;;  %v2518_v6 = vmax.f32 %v2466_v46, 0.0 }
 0x35c   : > { %v3215_v12 = vpop.f32.mrf.mxu1  ;;  %v3327_v43 = vpop.f32.mrf.mxu0  ;;  %v2791_v38 = vadd.f32 %v2790_v31, %v2789_v16 }
 0x35d   : > { %v3216_v53 = vadd.f32 %v3215_v12, %v3214_v4  ;;  %v2471_v50 = vadd.f32 %v3325_v47, %v2310_v45  ;;  %v3328_v10 = vadd.f32 %v3327_v43, %v3326_v40  ;;  %v2792_v60 = vsel %vm363_vm0, %v2739_v9, 0.0  ;;  %v2700_v40 = vpop.permute.xlu0 %2699  ;;  %v2705_v12 = vpop.permute.xlu1 %2704 }
 0x35e   : > { %v3217_v17 = vpop.f32.mrf.mxu1  ;;  %v3329_v11 = vpop.f32.mrf.mxu0  ;;  %v2742_v62 = vmul.f32 %v5234_v51, %v2518_v6  ;;  %v2793_v18 = vadd.f32 %v2792_v60, %v2791_v38 }
 0x35f   : > { %v2313_v42 = vadd.f32 %v3216_v53, %v5206_v41  ;;  %v2519_v58 = vmax.f32 %v2471_v50, 0.0  ;;  %v2741_v41 = vmul.f32 %v5216_v29, %v2517_v28 }
 0x360   : > { %v3218_v34 = vpop.f32.mrf.mxu1  ;;  %v3330_v30 = vpop.f32.mrf.mxu0  ;;  %v2795_v57 = vadd.f32 %v2794_v56, %v2793_v18  ;;  %v2798_v5 = vsel %vm363_vm0, %v2742_v62, 0.0 }
 0x361   : > { %v2474_v39 = vadd.f32 %v3328_v10, %v2313_v42  ;;  %v3219_v52 = vadd.f32 %v3218_v34, %v3217_v17  ;;  %v3331_v21 = vadd.f32 %v3330_v30, %v3329_v11  ;;  %v2743_v25 = vmul.f32 %v2690_v55, %v2519_v58  ;;  %v2710_v20 = vpop.permute.xlu0 %2709 }
 0x362   : > { %v3220_v59 = vpop.f32.mrf.mxu1  ;;  %v3332_v15 = vpop.f32.mrf.mxu0  ;;  %v2796_v29 = vsel %vm363_vm0, %v2741_v41, 0.0 }
 0x363   : > { %v2318_v35 = vadd.f32 %v3219_v52, %v5222_v54  ;;  %v2520_v14 = vmax.f32 %v2474_v39, 0.0  ;;  %v2797_v45 = vadd.f32 %v2796_v29, %v2795_v57  ;;  %v2800_v63 = vsel %vm363_vm0, %v2743_v25, 0.0  ;;  %v2715_v52 = vpop.permute.xlu1 %2714 }
 0x364   : > { %v3221_v36 = vpop.f32.mrf.mxu1  ;;  %v3333_v27 = vpop.f32.mrf.mxu0 }
 0x365   : > { %v2479_v49 = vadd.f32 %v3331_v21, %v2318_v35  ;;  %v3222_v7 = vadd.f32 %v3221_v36, %v3220_v59  ;;  %v3334_v32 = vadd.f32 %v3333_v27, %v3332_v15  ;;  %v2744_v51 = vmul.f32 %v2695_v1, %v2520_v14  ;;  %v2822_v27 = vpop.permute.xlu0 %2821 }
 0x366   : > { %v3223_v22 = vpop.f32.mrf.mxu1  ;;  %v3335_v26 = vpop.f32.mrf.mxu0  ;;  %v2799_v23 = vadd.f32 %v2798_v5, %v2797_v45  ;;  %v2824_v1 = vlaneseq }
 0x367   : > { %v2521_v48 = vmax.f32 %v2479_v49, 0.0  ;;  %v2321_v54 = vadd.f32 %v3222_v7, %v5240_v3  ;;  %v2802_v61 = vsel %vm363_vm0, %v2744_v51, 0.0 }
 0x368   : > { %v3224_v2 = vpop.f32.mrf.mxu1  ;;  %v3336_v4 = vpop.f32.mrf.mxu0  ;;  %v2801_v11 = vadd.f32 %v2800_v63, %v2799_v23  ;;  %v2825_v35 = vshrl.u32 %v2824_v1, 7 }
 0x369   : > { %v2482_v19 = vadd.f32 %v3334_v32, %v2321_v54  ;;  %v3225_v8 = vadd.f32 %v3224_v2, %v3223_v22  ;;  %v2745_v43 = vmul.f32 %v2700_v40, %v2521_v48  ;;  %v3337_v3 = vadd.f32 %v3336_v4, %v3335_v26 }
 0x36a   : > { %v3226_v0 = vpop.f32.mrf.mxu1  ;;  %v3338_v47 = vpop.f32.mrf.mxu0  ;;  %v2803_v44 = vadd.f32 %v2802_v61, %v2801_v11  ;;  %v2826_v56 = vsub.s32 0, %v2825_v35 }
 0x36b   : > { %v2522_v55 = vmax.f32 %v2482_v19, 0.0  ;;  %v2326_v33 = vadd.f32 %v3225_v8, %v1844_v13  ;;  %v2804_v9 = vsel %vm363_vm0, %v2745_v43, 0.0 }
 0x36c   : > { %v3227_v46 = vpop.f32.mrf.mxu1  ;;  %v3339_v53 = vpop.f32.mrf.mxu0  ;;  %v2805_v31 = vadd.f32 %v2804_v9, %v2803_v44  ;;  %v2827_v62 = vrot.slane %v2822_v27, %v2826_v56 }
 0x36d   : > { %v2746_v37 = vmul.f32 %v2705_v12, %v2522_v55  ;;  %v2487_v50 = vadd.f32 %v3337_v3, %v2326_v33  ;;  %v3228_v17 = vadd.f32 %v3227_v46, %v3226_v0  ;;  %v3340_v10 = vadd.f32 %v3339_v53, %v3338_v47 }
 0x36f   : > { %v2523_v28 = vmax.f32 %v2487_v50, 0.0  ;;  %v2329_v42 = vadd.f32 %v3228_v17, %v1849_v24  ;;  %v2806_v34 = vsel %vm363_vm0, %v2746_v37, 0.0 }
 0x370   : > { %v2807_v16 = vadd.f32 %v2806_v34, %v2805_v31 }
 0x371   : > { %v2747_v13 = vmul.f32 %v2710_v20, %v2523_v28  ;;  %v2490_v30 = vadd.f32 %v3340_v10, %v2329_v42 }
 0x373   : > { %v2808_v6 = vsel %vm363_vm0, %v2747_v13, 0.0  ;;  %v2524_v39 = vmax.f32 %v2490_v30, 0.0 }
 0x374   : > { %v2809_v59 = vadd.f32 %v2808_v6, %v2807_v16 }
 0x375   : > { %v2748_v58 = vmul.f32 %v2715_v52, %v2524_v39 }
 0x377   : > { %v2810_v15 = vsel %vm363_vm0, %v2748_v58, 0.0 }
 0x378   : > { %v2811_v60 = vadd.f32 %v2810_v15, %v2809_v59 }
 0x37a   : > { %v2812_v41 = vrot.slane %v2811_v60, 4 }
 0x37c   : > { %v2813_v21 = vadd.f32 %v2812_v41, %v2811_v60 }
 0x37e   : > { %v2814_v38 = vrot.slane %v2813_v21, 2 }
 0x380   : > { %v2815_v36 = vadd.f32 %v2814_v38, %v2813_v21 }
 0x382   : > { %v2816_v24 = vrot.slane %v2815_v36, 1 }
 0x384   : > { %v2817_v14 = vadd.f32 %v2816_v24, %v2815_v36 }
 0x386   : > { %v2828_v49 = vadd.f32 %v2827_v62, %v2817_v14 }
 0x388   : > { %v2829_v7 = vand.u32 2147483647, %v2828_v49  ;;  %vm2833_vm3 = vcmp.ge.f32.partialorder %v2828_v49, 0.0 }
 0x38a   : > { %v2830_v18 = vsub.f32 0.0, %v2829_v7 }
 0x38c   : > { %v2831_v25 = vmul.f32 1.442695, %v2830_v18 }
 0x38e   : > { %3617 = vpow2.f32 %v2831_v25 }
 0x39b   : > { %v3618_v22 = vpop.eup %3617 }
 0x39c   : > { %v2835_v26 = vadd.f32 1.0, %v3618_v22  ;;  %v2834_v48 = vsel %vm2833_vm3, 1.0, %v3618_v22 }
 0x39e   : > { %3619 = vrcp.f32 %v2835_v26 }
 0x3ab   : > { %v3620_v29 = vpop.eup %3619 }
 0x3ac   : > { %v2837_v54 = vmul.f32 %v3620_v29, %v2834_v48 }
 0x3ae   : > { %2839 = vst.msk [vmem:[%s3832_s30] sm:$0x1] %vm2838_vm4, %v2837_v54 }
 0x3af   : > { %3634 = shalt.err (!%p3631_p6)
}
 0x3b0   : > { %s3635_s17 = scalar_lea.hbm %s2852_s26, 16  ;;  %s3639_s21 = scalar_lea.hbm %s5318_s9, 32 }
 0x3b1   : > { %p3636_p7 = scmp.ne.s32.totalorder %s2852_s26, %s3635_s17  ;;  %p3640_p11 = scmp.lt.s32.totalorder %s2852_s26, %s5318_s9 }
 0x3b2   : > { %p3641_p12 = scmp.lt.s32.totalorder %s3639_s21, %s3635_s17 }
 0x3b3   : > { %p3637_p9 = pnand %p3636_p7, %p3803_p4 }
 0x3b4   : > { %p3642_p13 = por %p3641_p12, %p3640_p11 }
 0x3b5   : > { %p3638_p10 = pneg %p3637_p9 }
 0x3b7   : > { %p3643_p0 = pnand %p3642_p13, %p3638_p10 }
 0x3b9   : > { %3646 = shalt.err (!%p3643_p0)
}
 0x3ba   : > { %3420 = dma.vmem_to_hbm [thread:$0]  (%p3803_p4), %s2855_s10, 16, %s2852_s26, %s2841_s28  }
 0x3bb PF: > { %p3426_p1 = scmp.ge.s32.totalorder %s3701_s16, 2  ;;  %s2866_s27 = sand.u32 1, %s3681_s11  }
 0x3bc   : > { %s2867_s8 = scalar_lea.sflag [#allocation5], %s2866_s27 }
 0x3bd   : > { %p3423_p2 = pnand %p3426_p1, %p3810_p8 }
 0x3bf   : > { %p3424_p3 = pneg %p3423_p2 }
 0x3c1   : > { %3676 = dma.done.wait (%p3424_p3), %s2867_s8, 16  }
 0x3c2   : > { %3678 = vsyncadd (%p3424_p3), %s2867_s8, 4294967280  ;;  %s24_s16 = sadd.s32 1, %s3701_s16   ;;  %s5474_s11 = smov %s3685_s12 }
 0x3c3   : > { %p21_p5 = scmp.ge.s32.totalorder %s24_s16, 4   ;;  %s5475_s12 = smov %s3689_s13 }
 0x3c4   : > { %s5476_s13 = smov %s3816_s23  ;;  %s5477_s14 = smov %s3697_s15 }
 0x3c5   : > { %s5478_s15 = smov %s5480_s18  ;;  %23 = sbr.rel (!%p21_p5) target bundleno = 7 (0x7), region = 111 }
 0x3ca   :  { %2871 = vsyncpa [#allocation5], 1 }
 0x3cb   :  { %2873 = vsyncpa [#allocation5 + $0x1], 1 }

</bundles_post_ra>
